<compile_context>
chip_gen: v7x
topology: tpu7x:2x2x1
jax: 0.10.0
libtpu: 0.0.40
codegen_flags: <defaults>
</compile_context>

<pallas_src>
import functools
import math

import jax
import jax.numpy as jnp
from jax import lax
from jax.experimental import pallas as pl
from jax.experimental.pallas import tpu as pltpu

PACK = 4  # batch rows packed side-by-side along the lane axis


def _gelu_exact(x):
    # torch.nn.GELU default: 0.5 * x * (1 + erf(x / sqrt(2)))
    # TODO(synk): tanh-approx GELU would move the transcendental to the idle
    # EUP slot (large VALU saving) but deviates from torch by ~3e-4 abs.
    return 0.5 * x * (1.0 + lax.erf(x * (1.0 / math.sqrt(2.0))))


def _timenet_kernel(t_ref, coeff_ref, phase_ref,
                    w1_ref, b1_ref, w2_ref, b2_ref, w3_ref, b3_ref,
                    wo_ref, bo_ref, o_ref, *, strip, n_strips):
    """All operands are PACK-way lane-packed (see pack_params)."""

    def compute(tp):  # tp: (strip, PACK)
        # K=PACK outer product on the MXU broadcasts t across the packed lanes.
        arg = jnp.dot(tp, coeff_ref[...], preferred_element_type=jnp.float32)
        emb = jnp.sin(arg + phase_ref[...])                  # fused [sin, cos]
        h = _gelu_exact(jnp.dot(emb, w1_ref[...],
                                preferred_element_type=jnp.float32) + b1_ref[...])
        h = _gelu_exact(jnp.dot(h, w2_ref[...],
                                preferred_element_type=jnp.float32) + b2_ref[...])
        h = _gelu_exact(jnp.dot(h, w3_ref[...],
                                preferred_element_type=jnp.float32) + b3_ref[...])
        return jnp.dot(h, wo_ref[...],
                       preferred_element_type=jnp.float32) + bo_ref[...]

    if n_strips == 1:
        o_ref[...] = compute(t_ref[...]).astype(o_ref.dtype)
    else:
        # Strip-mine so MXU work of one strip overlaps GELU VALU of the previous.
        def body(s, carry):
            r0 = pl.multiple_of(s * strip, strip)
            o_ref[pl.ds(r0, strip), :] = compute(
                t_ref[pl.ds(r0, strip), :]).astype(o_ref.dtype)
            return carry

        lax.fori_loop(0, n_strips, body, 0, unroll=True)


def _block_diag(w, n):
    """(fi, fo) -> (n*fi, n*fo) block diagonal with n copies of w."""
    fi, fo = w.shape
    out = jnp.zeros((n * fi, n * fo), w.dtype)
    for j in range(n):
        out = out.at[j * fi:(j + 1) * fi, j * fo:(j + 1) * fo].set(w)
    return out


def pack_params(params, pack=PACK):
    """One-time preprocessing: sin/cos fold + PACK-way block-diagonal weights."""
    coeff2 = jnp.concatenate([params["coeff"], params["coeff"]], axis=1)          # (1, 2C)
    phase2 = jnp.concatenate([params["phase"],
                              params["phase"] + (math.pi / 2.0)], axis=1)          # (1, 2C)
    return dict(
        coeff=_block_diag(coeff2, pack),                # (pack, pack*2C)
        phase=jnp.tile(phase2, (1, pack)),              # (1, pack*2C)
        w1=_block_diag(params["w1"], pack), b1=jnp.tile(params["b1"], (1, pack)),
        w2=_block_diag(params["w2"], pack), b2=jnp.tile(params["b2"], (1, pack)),
        w3=_block_diag(params["w3"], pack), b3=jnp.tile(params["b3"], (1, pack)),
        wo=_block_diag(params["wo"], pack), bo=jnp.tile(params["bo"], (1, pack)),
    )


def _round_up(x, m):
    return ((x + m - 1) // m) * m


@functools.partial(jax.jit, static_argnames=("block_b",))
def timenet_forward(t, packed, *, block_b=4096):
    """t: (B, 1) or (B,) float. packed: pack_params(...). Returns (B, dim_out)."""
    t = t.reshape(-1, 1).astype(jnp.float32)
    B = t.shape[0]
    pack = packed["coeff"].shape[0]
    two_c_p = packed["coeff"].shape[1]          # pack * 2C
    ch_p = packed["w2"].shape[0]                # pack * C
    do_p = packed["wo"].shape[1]                # pack * dim_out
    dim_out = do_p // pack

    # Batch tile: multiple of 8*pack.  For large B aim for >=2 grid steps so the
    # "parallel" batch axis shards across both TensorCores on v7x.
    unit = 8 * pack
    tb = min(_round_up(block_b, unit),
             max(unit, _round_up(pl.cdiv(B, 2), unit)))
    b_pad = pl.cdiv(B, tb) * tb
    if b_pad != B:
        t = jnp.pad(t, ((0, b_pad - B), (0, 0)))
    t_packed = t.reshape(b_pad // pack, pack)   # row i = [t[pack*i], ..., t[pack*i+pack-1]]

    rows = tb // pack
    strip = 256 if (rows > 256 and rows % 256 == 0) else rows
    n_strips = rows // strip

    batch_map = lambda i: (i, 0)
    const_map = lambda i: (0, 0)

    in_specs = [
        pl.BlockSpec((rows, pack), batch_map),       # packed t
        pl.BlockSpec((pack, two_c_p), const_map),    # block-diag coeff2
        pl.BlockSpec((1, two_c_p), const_map),       # tiled phase2
        pl.BlockSpec((two_c_p, ch_p), const_map),    # block-diag W1
        pl.BlockSpec((1, ch_p), const_map),          # tiled b1
        pl.BlockSpec((ch_p, ch_p), const_map),       # block-diag W2
        pl.BlockSpec((1, ch_p), const_map),          # tiled b2
        pl.BlockSpec((ch_p, ch_p), const_map),       # block-diag W3
        pl.BlockSpec((1, ch_p), const_map),          # tiled b3
        pl.BlockSpec((ch_p, do_p), const_map),       # block-diag Wo
        pl.BlockSpec((1, do_p), const_map),          # tiled bo
    ]
    out_spec = pl.BlockSpec((rows, do_p), batch_map)

    out_packed = pl.pallas_call(
        functools.partial(_timenet_kernel, strip=strip, n_strips=n_strips),
        out_shape=jax.ShapeDtypeStruct((b_pad // pack, do_p), jnp.float32),
        grid=(b_pad // tb,),
        in_specs=in_specs,
        out_specs=out_spec,
        compiler_params=pltpu.CompilerParams(
            dimension_semantics=("parallel",)),
    )(t_packed, packed["coeff"], packed["phase"],
      packed["w1"], packed["b1"], packed["w2"], packed["b2"],
      packed["w3"], packed["b3"], packed["wo"], packed["bo"])

    # Row-major unpack (b_pad/pack, pack*dim_out) -> (b_pad, dim_out) is free.
    out = out_packed.reshape(b_pad, dim_out)
    return out[:B]


def make_params(key, channels=64, dim_out=32):
    """Deterministic synthetic init (PyTorch-Linear-like uniform bounds)."""
    ks = jax.random.split(key, 10)

    def linear(kw, kb, fan_in, fan_out):
        bound = 1.0 / math.sqrt(fan_in)
        w = jax.random.uniform(kw, (fan_in, fan_out), jnp.float32, -bound, bound)
        b = jax.random.uniform(kb, (1, fan_out), jnp.float32, -bound, bound)
        return w, b

    coeff = jnp.linspace(0.1, 100.0, channels, dtype=jnp.float32).reshape(1, channels)
    phase = jax.random.normal(ks[0], (1, channels), jnp.float32)
    w1, b1 = linear(ks[1], ks[2], 2 * channels, channels)
    w2, b2 = linear(ks[3], ks[4], channels, channels)
    w3, b3 = linear(ks[5], ks[6], channels, channels)
    wo, bo = linear(ks[7], ks[8], channels, dim_out)
    return dict(coeff=coeff, phase=phase, w1=w1, b1=b1, w2=w2, b2=b2,
                w3=w3, b3=b3, wo=wo, bo=bo)


def timenet_ref(t, p):
    """Pure-JAX reference of the PyTorch forward (for sanity check)."""
    t = t.reshape(-1, 1).astype(jnp.float32)
    arg = p["coeff"] * t + p["phase"]
    h = jnp.concatenate([jnp.sin(arg), jnp.cos(arg)], axis=1)
    h = _gelu_exact(h @ p["w1"] + p["b1"])
    h = _gelu_exact(h @ p["w2"] + p["b2"])
    h = _gelu_exact(h @ p["w3"] + p["b3"])
    return h @ p["wo"] + p["bo"]


if __name__ == "__main__":
    key = jax.random.PRNGKey(0)
    k_t, k_t2, k_t3, k_p = jax.random.split(key, 4)

    channels, dim_out = 64, 32
    params = make_params(k_p, channels=channels, dim_out=dim_out)
    packed = pack_params(params)

    # Small case (single grid step, padded to one 32-row tile).
    B = 8
    t = jax.random.uniform(k_t, (B, 1), jnp.float32, 0.0, 1.0)
    out = jax.block_until_ready(timenet_forward(t, packed))
    ref = timenet_ref(t, params)
    assert out.shape == (B, dim_out)
    assert jnp.allclose(out, ref, atol=1e-4, rtol=1e-4), "mismatch vs reference (B=8)"

    # Non-multiple-of-tile case exercising the multi-step batch grid + padding.
    B2 = 100
    t2 = jax.random.uniform(k_t2, (B2, 1), jnp.float32, 0.0, 1.0)
    out2 = jax.block_until_ready(timenet_forward(t2, packed, block_b=64))
    ref2 = timenet_ref(t2, params)
    assert out2.shape == (B2, dim_out)
    assert jnp.allclose(out2, ref2, atol=1e-4, rtol=1e-4), "mismatch vs reference (B=100)"

    # Larger case exercising the 2-step parallel grid and in-kernel strip loop.
    B3 = 4096
    t3 = jax.random.uniform(k_t3, (B3, 1), jnp.float32, 0.0, 1.0)
    out3 = jax.block_until_ready(timenet_forward(t3, packed))
    ref3 = timenet_ref(t3, params)
    assert out3.shape == (B3, dim_out)
    assert jnp.allclose(out3, ref3, atol=1e-4, rtol=1e-4), "mismatch vs reference (B=4096)"

    print("KERNEL_OK")
</pallas_src>

<mosaic_0001>
module attributes {stable_mosaic.version = 11 : i64} {
  func.func @_timenet_kernel(%arg0: i32, %arg1: memref<8x4xf32, #tpu.memory_space<vmem>>, %arg2: memref<4x512xf32, #tpu.memory_space<vmem>>, %arg3: memref<1x512xf32, #tpu.memory_space<vmem>>, %arg4: memref<512x256xf32, #tpu.memory_space<vmem>>, %arg5: memref<1x256xf32, #tpu.memory_space<vmem>>, %arg6: memref<256x256xf32, #tpu.memory_space<vmem>>, %arg7: memref<1x256xf32, #tpu.memory_space<vmem>>, %arg8: memref<256x256xf32, #tpu.memory_space<vmem>>, %arg9: memref<1x256xf32, #tpu.memory_space<vmem>>, %arg10: memref<256x128xf32, #tpu.memory_space<vmem>>, %arg11: memref<1x128xf32, #tpu.memory_space<vmem>>, %arg12: memref<8x128xf32, #tpu.memory_space<vmem>>) attributes {dimension_semantics = [#tpu.dimension_semantics<parallel>], iteration_bounds = array<i64: 1>, scalar_prefetch = 0 : i64, scratch_operands = 0 : i64, tpu.core_type = #tpu.core_type<tc>, window_params = [{transform_indices = @transform_0, window_bounds = array<i64: 8, 4>}, {pipeline_mode = #tpu.pipeline_mode<synchronous>, transform_indices = @transform_1, window_bounds = array<i64: 4, 512>}, {pipeline_mode = #tpu.pipeline_mode<synchronous>, transform_indices = @transform_2, window_bounds = array<i64: 1, 512>}, {pipeline_mode = #tpu.pipeline_mode<synchronous>, transform_indices = @transform_3, window_bounds = array<i64: 512, 256>}, {pipeline_mode = #tpu.pipeline_mode<synchronous>, transform_indices = @transform_4, window_bounds = array<i64: 1, 256>}, {pipeline_mode = #tpu.pipeline_mode<synchronous>, transform_indices = @transform_5, window_bounds = array<i64: 256, 256>}, {pipeline_mode = #tpu.pipeline_mode<synchronous>, transform_indices = @transform_6, window_bounds = array<i64: 1, 256>}, {pipeline_mode = #tpu.pipeline_mode<synchronous>, transform_indices = @transform_7, window_bounds = array<i64: 256, 256>}, {pipeline_mode = #tpu.pipeline_mode<synchronous>, transform_indices = @transform_8, window_bounds = array<i64: 1, 256>}, {pipeline_mode = #tpu.pipeline_mode<synchronous>, transform_indices = @transform_9, window_bounds = array<i64: 256, 128>}, {pipeline_mode = #tpu.pipeline_mode<synchronous>, transform_indices = @transform_10, window_bounds = array<i64: 1, 128>}, {transform_indices = @transform_11, window_bounds = array<i64: 8, 128>}]} {
    %c0 = arith.constant 0 : index
    %c0_0 = arith.constant 0 : index
    %0 = vector.load %arg1[%c0, %c0_0] : memref<8x4xf32, #tpu.memory_space<vmem>>, vector<8x4xf32>
    %c0_1 = arith.constant 0 : index
    %c0_2 = arith.constant 0 : index
    %1 = vector.load %arg2[%c0_1, %c0_2] : memref<4x512xf32, #tpu.memory_space<vmem>>, vector<4x512xf32>
    %cst = arith.constant dense<0.000000e+00> : vector<8x512xf32>
    %2 = tpu.matmul %0, %1, %cst {dimension_numbers = #tpu.dot_dimension_numbers<[1], [0], [0], [1], [0, 0, 1, 1], [], []>} : vector<8x4xf32>, vector<4x512xf32>, vector<8x512xf32> -> vector<8x512xf32>
    %c0_3 = arith.constant 0 : index
    %c0_4 = arith.constant 0 : index
    %3 = vector.load %arg3[%c0_3, %c0_4] : memref<1x512xf32, #tpu.memory_space<vmem>>, vector<1x512xf32>
    %4 = vector.broadcast %3 : vector<1x512xf32> to vector<8x512xf32>
    %5 = arith.addf %2, %4 : vector<8x512xf32>
    %6 = math.sin %5 : vector<8x512xf32>
    %c0_5 = arith.constant 0 : index
    %c0_6 = arith.constant 0 : index
    %7 = vector.load %arg4[%c0_5, %c0_6] : memref<512x256xf32, #tpu.memory_space<vmem>>, vector<512x256xf32>
    %cst_7 = arith.constant dense<0.000000e+00> : vector<8x256xf32>
    %8 = tpu.matmul %6, %7, %cst_7 {dimension_numbers = #tpu.dot_dimension_numbers<[1], [0], [0], [1], [0, 0, 1, 1], [], []>} : vector<8x512xf32>, vector<512x256xf32>, vector<8x256xf32> -> vector<8x256xf32>
    %c0_8 = arith.constant 0 : index
    %c0_9 = arith.constant 0 : index
    %9 = vector.load %arg5[%c0_8, %c0_9] : memref<1x256xf32, #tpu.memory_space<vmem>>, vector<1x256xf32>
    %10 = vector.broadcast %9 : vector<1x256xf32> to vector<8x256xf32>
    %11 = arith.addf %8, %10 : vector<8x256xf32>
    %cst_10 = arith.constant 5.000000e-01 : f32
    %12 = vector.broadcast %cst_10 : f32 to vector<8x256xf32>
    %13 = arith.mulf %12, %11 : vector<8x256xf32>
    %cst_11 = arith.constant 0.707106769 : f32
    %14 = vector.broadcast %cst_11 : f32 to vector<8x256xf32>
    %15 = arith.mulf %11, %14 : vector<8x256xf32>
    %16 = math.erf %15 : vector<8x256xf32>
    %cst_12 = arith.constant 1.000000e+00 : f32
    %17 = vector.broadcast %cst_12 : f32 to vector<8x256xf32>
    %18 = arith.addf %17, %16 : vector<8x256xf32>
    %19 = arith.mulf %13, %18 : vector<8x256xf32>
    %c0_13 = arith.constant 0 : index
    %c0_14 = arith.constant 0 : index
    %20 = vector.load %arg6[%c0_13, %c0_14] : memref<256x256xf32, #tpu.memory_space<vmem>>, vector<256x256xf32>
    %cst_15 = arith.constant dense<0.000000e+00> : vector<8x256xf32>
    %21 = tpu.matmul %19, %20, %cst_15 {dimension_numbers = #tpu.dot_dimension_numbers<[1], [0], [0], [1], [0, 0, 1, 1], [], []>} : vector<8x256xf32>, vector<256x256xf32>, vector<8x256xf32> -> vector<8x256xf32>
    %c0_16 = arith.constant 0 : index
    %c0_17 = arith.constant 0 : index
    %22 = vector.load %arg7[%c0_16, %c0_17] : memref<1x256xf32, #tpu.memory_space<vmem>>, vector<1x256xf32>
    %23 = vector.broadcast %22 : vector<1x256xf32> to vector<8x256xf32>
    %24 = arith.addf %21, %23 : vector<8x256xf32>
    %cst_18 = arith.constant 5.000000e-01 : f32
    %25 = vector.broadcast %cst_18 : f32 to vector<8x256xf32>
    %26 = arith.mulf %25, %24 : vector<8x256xf32>
    %cst_19 = arith.constant 0.707106769 : f32
    %27 = vector.broadcast %cst_19 : f32 to vector<8x256xf32>
    %28 = arith.mulf %24, %27 : vector<8x256xf32>
    %29 = math.erf %28 : vector<8x256xf32>
    %cst_20 = arith.constant 1.000000e+00 : f32
    %30 = vector.broadcast %cst_20 : f32 to vector<8x256xf32>
    %31 = arith.addf %30, %29 : vector<8x256xf32>
    %32 = arith.mulf %26, %31 : vector<8x256xf32>
    %c0_21 = arith.constant 0 : index
    %c0_22 = arith.constant 0 : index
    %33 = vector.load %arg8[%c0_21, %c0_22] : memref<256x256xf32, #tpu.memory_space<vmem>>, vector<256x256xf32>
    %cst_23 = arith.constant dense<0.000000e+00> : vector<8x256xf32>
    %34 = tpu.matmul %32, %33, %cst_23 {dimension_numbers = #tpu.dot_dimension_numbers<[1], [0], [0], [1], [0, 0, 1, 1], [], []>} : vector<8x256xf32>, vector<256x256xf32>, vector<8x256xf32> -> vector<8x256xf32>
    %c0_24 = arith.constant 0 : index
    %c0_25 = arith.constant 0 : index
    %35 = vector.load %arg9[%c0_24, %c0_25] : memref<1x256xf32, #tpu.memory_space<vmem>>, vector<1x256xf32>
    %36 = vector.broadcast %35 : vector<1x256xf32> to vector<8x256xf32>
    %37 = arith.addf %34, %36 : vector<8x256xf32>
    %cst_26 = arith.constant 5.000000e-01 : f32
    %38 = vector.broadcast %cst_26 : f32 to vector<8x256xf32>
    %39 = arith.mulf %38, %37 : vector<8x256xf32>
    %cst_27 = arith.constant 0.707106769 : f32
    %40 = vector.broadcast %cst_27 : f32 to vector<8x256xf32>
    %41 = arith.mulf %37, %40 : vector<8x256xf32>
    %42 = math.erf %41 : vector<8x256xf32>
    %cst_28 = arith.constant 1.000000e+00 : f32
    %43 = vector.broadcast %cst_28 : f32 to vector<8x256xf32>
    %44 = arith.addf %43, %42 : vector<8x256xf32>
    %45 = arith.mulf %39, %44 : vector<8x256xf32>
    %c0_29 = arith.constant 0 : index
    %c0_30 = arith.constant 0 : index
    %46 = vector.load %arg10[%c0_29, %c0_30] : memref<256x128xf32, #tpu.memory_space<vmem>>, vector<256x128xf32>
    %cst_31 = arith.constant dense<0.000000e+00> : vector<8x128xf32>
    %47 = tpu.matmul %45, %46, %cst_31 {dimension_numbers = #tpu.dot_dimension_numbers<[1], [0], [0], [1], [0, 0, 1, 1], [], []>} : vector<8x256xf32>, vector<256x128xf32>, vector<8x128xf32> -> vector<8x128xf32>
    %c0_32 = arith.constant 0 : index
    %c0_33 = arith.constant 0 : index
    %48 = vector.load %arg11[%c0_32, %c0_33] : memref<1x128xf32, #tpu.memory_space<vmem>>, vector<1x128xf32>
    %49 = vector.broadcast %48 : vector<1x128xf32> to vector<8x128xf32>
    %50 = arith.addf %47, %49 : vector<8x128xf32>
    %c0_34 = arith.constant 0 : index
    %c0_35 = arith.constant 0 : index
    %51 = vector.load %arg12[%c0_34, %c0_35] : memref<8x128xf32, #tpu.memory_space<vmem>>, vector<8x128xf32>
    tpu.vector_store %arg12[%c0_34, %c0_35], %50 {strides = array<i32>} : memref<8x128xf32, #tpu.memory_space<vmem>>, vector<8x128xf32>,
    return
  }
  func.func @transform_0(%arg0: i32) -> (i32, i32) {
    %c0_i32 = arith.constant 0 : i32
    %c0_i32_0 = arith.constant 0 : i32
    return %arg0, %c0_i32 : i32, i32
  }
  func.func @transform_1(%arg0: i32) -> (i32, i32) {
    %c0_i32 = arith.constant 0 : i32
    %c0_i32_0 = arith.constant 0 : i32
    %c0_i32_1 = arith.constant 0 : i32
    return %c0_i32, %c0_i32_0 : i32, i32
  }
  func.func @transform_2(%arg0: i32) -> (i32, i32) {
    %c0_i32 = arith.constant 0 : i32
    %c0_i32_0 = arith.constant 0 : i32
    %c0_i32_1 = arith.constant 0 : i32
    return %c0_i32, %c0_i32_0 : i32, i32
  }
  func.func @transform_3(%arg0: i32) -> (i32, i32) {
    %c0_i32 = arith.constant 0 : i32
    %c0_i32_0 = arith.constant 0 : i32
    %c0_i32_1 = arith.constant 0 : i32
    return %c0_i32, %c0_i32_0 : i32, i32
  }
  func.func @transform_4(%arg0: i32) -> (i32, i32) {
    %c0_i32 = arith.constant 0 : i32
    %c0_i32_0 = arith.constant 0 : i32
    %c0_i32_1 = arith.constant 0 : i32
    return %c0_i32, %c0_i32_0 : i32, i32
  }
  func.func @transform_5(%arg0: i32) -> (i32, i32) {
    %c0_i32 = arith.constant 0 : i32
    %c0_i32_0 = arith.constant 0 : i32
    %c0_i32_1 = arith.constant 0 : i32
    return %c0_i32, %c0_i32_0 : i32, i32
  }
  func.func @transform_6(%arg0: i32) -> (i32, i32) {
    %c0_i32 = arith.constant 0 : i32
    %c0_i32_0 = arith.constant 0 : i32
    %c0_i32_1 = arith.constant 0 : i32
    return %c0_i32, %c0_i32_0 : i32, i32
  }
  func.func @transform_7(%arg0: i32) -> (i32, i32) {
    %c0_i32 = arith.constant 0 : i32
    %c0_i32_0 = arith.constant 0 : i32
    %c0_i32_1 = arith.constant 0 : i32
    return %c0_i32, %c0_i32_0 : i32, i32
  }
  func.func @transform_8(%arg0: i32) -> (i32, i32) {
    %c0_i32 = arith.constant 0 : i32
    %c0_i32_0 = arith.constant 0 : i32
    %c0_i32_1 = arith.constant 0 : i32
    return %c0_i32, %c0_i32_0 : i32, i32
  }
  func.func @transform_9(%arg0: i32) -> (i32, i32) {
    %c0_i32 = arith.constant 0 : i32
    %c0_i32_0 = arith.constant 0 : i32
    %c0_i32_1 = arith.constant 0 : i32
    return %c0_i32, %c0_i32_0 : i32, i32
  }
  func.func @transform_10(%arg0: i32) -> (i32, i32) {
    %c0_i32 = arith.constant 0 : i32
    %c0_i32_0 = arith.constant 0 : i32
    %c0_i32_1 = arith.constant 0 : i32
    return %c0_i32, %c0_i32_0 : i32, i32
  }
  func.func @transform_11(%arg0: i32) -> (i32, i32) {
    %c0_i32 = arith.constant 0 : i32
    %c0_i32_0 = arith.constant 0 : i32
    return %arg0, %c0_i32 : i32, i32
  }
}

</mosaic_0001>

<bundles_post_ra>
// kernel: timenet_forward.1
= control target key start
LH: loop header
LB: loop body
LE: loop exit
PB: predicated region body
PF: predicated region fallthrough
CT: control target
= control target key end

     0   :  { %16 = vsyncpa [#allocation3], 0  ;;  %s2423_s0 = inlined_call_operand.vmem [shape: f32[8,4], index: 0, kind: input, shape index: {}]   ;;  %s2424_s1 = inlined_call_operand.vmem [shape: f32[4,512], index: 1, kind: input, shape index: {}]   ;;  %s2425_s2 = inlined_call_operand.vmem [shape: f32[1,512], index: 2, kind: input, shape index: {}]   ;;  %s2426_s3 = inlined_call_operand.hbm [shape: f32[512,256], index: 3, kind: input, shape index: {}]   ;;  %s2427_s4 = inlined_call_operand.vmem [shape: f32[1,256], index: 4, kind: input, shape index: {}]   ;;  %s2428_s5 = inlined_call_operand.hbm [shape: f32[256,256], index: 5, kind: input, shape index: {}]   ;;  %s2429_s6 = inlined_call_operand.vmem [shape: f32[1,256], index: 6, kind: input, shape index: {}]   ;;  %s2430_s7 = inlined_call_operand.hbm [shape: f32[256,256], index: 7, kind: input, shape index: {}]   ;;  %s2431_s8 = inlined_call_operand.vmem [shape: f32[1,256], index: 8, kind: input, shape index: {}]   ;;  %s2432_s9 = inlined_call_operand.hbm [shape: f32[256,128], index: 9, kind: input, shape index: {}]   ;;  %s2433_s10 = inlined_call_operand.vmem [shape: f32[1,128], index: 10, kind: input, shape index: {}]   ;;  %s2434_s11 = inlined_call_operand.vmem [shape: f32[8,128], index: 11, kind: output, shape index: {}]  }
   0x1   :  { %17 = vsyncpa [#allocation5], 0 }
   0x2   :  { %18 = vsyncpa [#allocation8], 0  ;;  %s1921_s17 = smov [#allocation4]   ;;  %s1922_s19 = smov [#allocation2]  }
   0x3   :  { %s44_s18 = sshll.u32 %s1921_s17, 4  ;;  %s30_s20 = sshll.u32 %s1922_s19, 4  ;;  %s45_s18 = int_to_ptr.vmem [resolvable:$true] %s44_s18  ;;  %s1996_s20 = int_to_ptr.vmem [resolvable:$true] %s30_s20 }
   0x4   :  { %s1827_s23 = scalar_lea.hbm %s2428_s5, 8192 }
   0x5   :  { %p1828_p0 = scmp.ne.s32.totalorder %s2428_s5, %s1827_s23  ;;  %p1831_p1 = scmp.lt.u32.totalorder %s1827_s23, %s2428_s5 }
   0x7   :  { %p1833_p2 = pnand %p1831_p1, %p1828_p0 }
   0x9   :  { %1836 = shalt.err (!%p1833_p2)
}
   0xa   :  { %s1837_s28 = scalar_lea.vmem %s45_s18, 8192  ;;  %p1842_p4 = scmp.lt.s32.totalorder %s45_s18, %s45_s18 }
   0xb   :  { %p1838_p3 = scmp.ne.s32.totalorder %s45_s18, %s1837_s28  ;;  %p1843_p5 = scmp.lt.s32.totalorder %s1837_s28, %s1837_s28 }
   0xd   :  { %p1844_p6 = por %p1843_p5, %p1842_p4 }
   0xf   :  { %p1845_p7 = pnand %p1844_p6, %p1838_p3 }
  0x11   :  { %1848 = shalt.err (!%p1845_p7)
}
  0x12   :  { %s1923_s29 = smov 256   ;;  %s1924_s30 = smov 16  }
  0x13   :  { %50 = dma.hbm_to_vmem [thread:$0]  %s2428_s5, 8192, %s45_s18, [#allocation5], %s1923_s29, %s1923_s29, %s1924_s30  }
  0x14   :  { %s1849_s16 = scalar_lea.hbm %s2426_s3, 16384 }
  0x15   :  { %p1850_p8 = scmp.ne.s32.totalorder %s2426_s3, %s1849_s16  ;;  %p1853_p9 = scmp.lt.u32.totalorder %s1849_s16, %s2426_s3 }
  0x17   :  { %p1855_p10 = pnand %p1853_p9, %p1850_p8 }
  0x19   :  { %1858 = shalt.err (!%p1855_p10)
}
  0x1a   :  { %s1859_s23 = scalar_lea.vmem %s1996_s20, 16384  ;;  %p1864_p12 = scmp.lt.s32.totalorder %s1996_s20, %s1996_s20 }
  0x1b   :  { %p1860_p11 = scmp.ne.s32.totalorder %s1996_s20, %s1859_s23  ;;  %p1865_p13 = scmp.lt.s32.totalorder %s1859_s23, %s1859_s23 }
  0x1d   :  { %p1866_p0 = por %p1865_p13, %p1864_p12 }
  0x1f   :  { %p1867_p1 = pnand %p1866_p0, %p1860_p11 }
  0x21   :  { %1870 = shalt.err (!%p1867_p1)
}
  0x22   :  { %36 = dma.hbm_to_vmem [thread:$0]  %s2426_s3, 16384, %s1996_s20, [#allocation3], %s1923_s29, %s1923_s29, %s1924_s30  }
  0x23   :  { %s1925_s24 = smov [#allocation6]   ;;  %s1926_s26 = smov [#allocation7]  }
  0x24   :  { %s58_s25 = sshll.u32 %s1925_s24, 4  ;;  %s72_s27 = sshll.u32 %s1926_s26, 4  ;;  %s59_s25 = int_to_ptr.vmem [resolvable:$true] %s58_s25  ;;  %s2033_s27 = int_to_ptr.vmem [resolvable:$true] %s72_s27 }
  0x25   :  { %s1871_s13 = scalar_lea.hbm %s2430_s7, 8192 }
  0x26   :  { %p1872_p2 = scmp.ne.s32.totalorder %s2430_s7, %s1871_s13  ;;  %p1875_p3 = scmp.lt.u32.totalorder %s1871_s13, %s2430_s7 }
  0x28   :  { %p1877_p4 = pnand %p1875_p3, %p1872_p2 }
  0x2a   :  { %1880 = shalt.err (!%p1877_p4)
}
  0x2b   :  { %s1881_s3 = scalar_lea.vmem %s59_s25, 8192  ;;  %p1886_p6 = scmp.lt.s32.totalorder %s59_s25, %s59_s25 }
  0x2c   :  { %p1882_p5 = scmp.ne.s32.totalorder %s59_s25, %s1881_s3  ;;  %p1887_p7 = scmp.lt.s32.totalorder %s1881_s3, %s1881_s3 }
  0x2e   :  { %p1888_p8 = por %p1887_p7, %p1886_p6 }
  0x30   :  { %p1889_p9 = pnand %p1888_p8, %p1882_p5 }
  0x32   :  { %1892 = shalt.err (!%p1889_p9)
}
  0x33   :  { %64 = dma.hbm_to_vmem [thread:$0]  %s2430_s7, 8192, %s59_s25, [#allocation5], %s1923_s29, %s1923_s29, %s1924_s30  }
  0x34   :  { %s1893_s23 = scalar_lea.hbm %s2432_s9, 4096 }
  0x35   :  { %p1894_p10 = scmp.ne.s32.totalorder %s2432_s9, %s1893_s23  ;;  %p1897_p11 = scmp.lt.u32.totalorder %s1893_s23, %s2432_s9 }
  0x37   :  { %p1899_p12 = pnand %p1897_p11, %p1894_p10 }
  0x39   :  { %1902 = shalt.err (!%p1899_p12)
}
  0x3a   :  { %s1903_s28 = scalar_lea.vmem %s2033_s27, 4096  ;;  %p1908_p0 = scmp.lt.s32.totalorder %s2033_s27, %s2033_s27 }
  0x3b   :  { %p1904_p13 = scmp.ne.s32.totalorder %s2033_s27, %s1903_s28  ;;  %p1909_p1 = scmp.lt.s32.totalorder %s1903_s28, %s1903_s28 }
  0x3d   :  { %p1910_p2 = por %p1909_p1, %p1908_p0 }
  0x3f   :  { %p1911_p3 = pnand %p1910_p2, %p1904_p13 }
  0x41   :  { %1914 = shalt.err (!%p1911_p3)
}
  0x42   :  { %s1927_s7 = smov 128   ;;  %s1928_s29 = smov 8  }
  0x43   :  { %78 = dma.hbm_to_vmem [thread:$0]  %s2432_s9, 4096, %s2033_s27, [#allocation8], %s1927_s7, %s1927_s7, %s1928_s29  }
  0x44   :  { %1915 = dma.done.wait [#allocation3], 16384  }
  0x45   :  { %1916 = vsyncadd [#allocation3], 4294950912 }
  0x46   :  { %1917 = dma.done.wait [#allocation5], 16384  }
  0x47   :  { %1918 = vsyncadd [#allocation5], 4294950912 }
  0x48   :  { %1919 = dma.done.wait [#allocation8], 4096  }
  0x49   :  { %1920 = vsyncadd [#allocation8], 4294963200  ;;  %v1929_v0 = vmov 0.0   ;;  %v94_v1 = vld [vmem:[%s2424_s1] sm:$0xff]  ;;  %vm126_vm0 = vcmask 1043456   ;;  %v95_v2 = vld [vmem:[%s2424_s1 + $0x8] sm:$0xff] }
  0x4a   :  { %199 = vmatprep.mubr.f32.mxu1 %v1929_v0  ;;  %v120_v3 = vcombine.high %v94_v1, %v94_v1  ;;  %v121_v4 = vcombine.high %v95_v2, %v95_v2  ;;  %v93_v5 = vld [vmem:[%s2423_s0] sm:$0xff]  ;;  %vm122_vm1 = vcmask 31744   ;;  %v694_v6 = vld [vmem:[#allocation2 + $0x8] sm:$0xff]  ;;  %v696_v7 = vld [vmem:[#allocation2 + $0x18] sm:$0xff] }
  0x4b   :  { %v1474_v8 = vpack.c.bf16 %v696_v7, %v694_v6  ;;  %v693_v9 = vld [vmem:[#allocation2] sm:$0xff]  ;;  %v695_v10 = vld [vmem:[#allocation2 + $0x10] sm:$0xff]  ;;  %v698_v12 = vld [vmem:[#allocation2 + $0x28] sm:$0xff] }
  0x4c   :  { %1416 = vmatprep.subr.msk.mxu1 %vm126_vm0, %v120_v3  ;;  %v1476_v11 = vpack.c.bf16 %v695_v10, %v693_v9  ;;  %v700_v13 = vld [vmem:[#allocation2 + $0x38] sm:$0xff]  ;;  %v697_v15 = vld [vmem:[#allocation2 + $0x20] sm:$0xff]  ;;  %v699_v16 = vld [vmem:[#allocation2 + $0x30] sm:$0xff] }
  0x4d   :  { %1417 = vmatpush1.msk.msra.mxu1 %vm126_vm0, %v94_v1  ;;  %1475 = vmatprep.subr.bf16.mxu0 %v1474_v8  ;;  %v1478_v14 = vpack.c.bf16 %v700_v13, %v698_v12  ;;  %v1480_v17 = vpack.c.bf16 %v699_v16, %v697_v15  ;;  %v702_v18 = vld [vmem:[#allocation2 + $0x48] sm:$0xff]  ;;  %v704_v19 = vld [vmem:[#allocation2 + $0x58] sm:$0xff]  ;;  %v701_v21 = vld [vmem:[#allocation2 + $0x40] sm:$0xff] }
  0x4e   :  { %1418 = vmatmul.mubr.msk.f32.vlgmr.msra.gmra.mrb[0].mxu1 %vm122_vm1, %v93_v5  ;;  %1419 = vmatprep.subr.msk.mxu1 %vm126_vm0, %v121_v4  ;;  %v1482_v20 = vpack.c.bf16 %v704_v19, %v702_v18  ;;  %v703_v22 = vld [vmem:[#allocation2 + $0x50] sm:$0xff]  ;;  %v706_v24 = vld [vmem:[#allocation2 + $0x68] sm:$0xff]  ;;  %v708_v25 = vld [vmem:[#allocation2 + $0x78] sm:$0xff] }
  0x4f   :  { %1420 = vmatpush1.msk.msra.mxu1 %vm126_vm0, %v95_v2  ;;  %270 = vmatprep.mubr.f32.mxu1 %v1929_v0  ;;  %v1484_v23 = vpack.c.bf16 %v703_v22, %v701_v21  ;;  %v1486_v26 = vpack.c.bf16 %v708_v25, %v706_v24  ;;  %v705_v27 = vld [vmem:[#allocation2 + $0x60] sm:$0xff]  ;;  %v707_v28 = vld [vmem:[#allocation2 + $0x70] sm:$0xff]  ;;  %v710_v30 = vld [vmem:[#allocation2 + $0x88] sm:$0xff] }
  0x50   :  { %1477 = vmatpush1.bf16.msra.mxu0 %v1476_v11  ;;  %v1488_v29 = vpack.c.bf16 %v707_v28, %v705_v27  ;;  %v712_v31 = vld [vmem:[#allocation2 + $0x98] sm:$0xff]  ;;  %v709_v33 = vld [vmem:[#allocation2 + $0x80] sm:$0xff]  ;;  %v711_v34 = vld [vmem:[#allocation2 + $0x90] sm:$0xff] }
  0x51   :  { %1479 = vmatprep.subr.bf16.mxu0 %v1478_v14  ;;  %v1490_v32 = vpack.c.bf16 %v712_v31, %v710_v30  ;;  %v1492_v35 = vpack.c.bf16 %v711_v34, %v709_v33  ;;  %v714_v36 = vld [vmem:[#allocation2 + $0xa8] sm:$0xff]  ;;  %v716_v37 = vld [vmem:[#allocation2 + $0xb8] sm:$0xff]  ;;  %v713_v39 = vld [vmem:[#allocation2 + $0xa0] sm:$0xff] }
  0x52   :  { %1421 = vmatmul.mubr.msk.f32.vlgmr.msra.gmra.mrb[2].mxu1 %vm122_vm1, %v93_v5  ;;  %v1494_v38 = vpack.c.bf16 %v716_v37, %v714_v36  ;;  %v715_v40 = vld [vmem:[#allocation2 + $0xb0] sm:$0xff]  ;;  %v718_v42 = vld [vmem:[#allocation2 + $0xc8] sm:$0xff]  ;;  %v720_v43 = vld [vmem:[#allocation2 + $0xd8] sm:$0xff] }
  0x53   :  { %v1496_v41 = vpack.c.bf16 %v715_v40, %v713_v39  ;;  %v1498_v44 = vpack.c.bf16 %v720_v43, %v718_v42  ;;  %v717_v45 = vld [vmem:[#allocation2 + $0xc0] sm:$0xff]  ;;  %v719_v46 = vld [vmem:[#allocation2 + $0xd0] sm:$0xff]  ;;  %v722_v48 = vld [vmem:[#allocation2 + $0xe8] sm:$0xff] }
  0x54   :  { %1481 = vmatpush1.bf16.msra.mxu0 %v1480_v17  ;;  %v1500_v47 = vpack.c.bf16 %v719_v46, %v717_v45  ;;  %v724_v49 = vld [vmem:[#allocation2 + $0xf8] sm:$0xff]  ;;  %v721_v51 = vld [vmem:[#allocation2 + $0xe0] sm:$0xff]  ;;  %v723_v52 = vld [vmem:[#allocation2 + $0xf0] sm:$0xff] }
  0x55   :  { %1483 = vmatprep.subr.bf16.mxu0 %v1482_v20  ;;  %v1502_v50 = vpack.c.bf16 %v724_v49, %v722_v48  ;;  %v1504_v53 = vpack.c.bf16 %v723_v52, %v721_v51  ;;  %v726_v54 = vld [vmem:[#allocation2 + $0x108] sm:$0xff]  ;;  %v728_v55 = vld [vmem:[#allocation2 + $0x118] sm:$0xff]  ;;  %v725_v57 = vld [vmem:[#allocation2 + $0x100] sm:$0xff] }
  0x56   :  { %v1506_v56 = vpack.c.bf16 %v728_v55, %v726_v54  ;;  %v727_v58 = vld [vmem:[#allocation2 + $0x110] sm:$0xff]  ;;  %v730_v60 = vld [vmem:[#allocation2 + $0x128] sm:$0xff]  ;;  %v732_v61 = vld [vmem:[#allocation2 + $0x138] sm:$0xff] }
  0x57   :  { %v1508_v59 = vpack.c.bf16 %v727_v58, %v725_v57  ;;  %v1510_v62 = vpack.c.bf16 %v732_v61, %v730_v60  ;;  %v729_v63 = vld [vmem:[#allocation2 + $0x120] sm:$0xff]  ;;  %v731_v0 = vld [vmem:[#allocation2 + $0x130] sm:$0xff]  ;;  %v734_v2 = vld [vmem:[#allocation2 + $0x148] sm:$0xff] }
  0x58   :  { %1485 = vmatpush1.bf16.msra.mxu0 %v1484_v23  ;;  %v1512_v1 = vpack.c.bf16 %v731_v0, %v729_v63  ;;  %v736_v3 = vld [vmem:[#allocation2 + $0x158] sm:$0xff]  ;;  %v733_v5 = vld [vmem:[#allocation2 + $0x140] sm:$0xff]  ;;  %v735_v6 = vld [vmem:[#allocation2 + $0x150] sm:$0xff] }
  0x59   :  { %1487 = vmatprep.subr.bf16.mxu0 %v1486_v26  ;;  %v1514_v4 = vpack.c.bf16 %v736_v3, %v734_v2  ;;  %v1516_v7 = vpack.c.bf16 %v735_v6, %v733_v5  ;;  %v738_v8 = vld [vmem:[#allocation2 + $0x168] sm:$0xff]  ;;  %v740_v9 = vld [vmem:[#allocation2 + $0x178] sm:$0xff]  ;;  %v737_v11 = vld [vmem:[#allocation2 + $0x160] sm:$0xff] }
  0x5a   :  { %v1518_v10 = vpack.c.bf16 %v740_v9, %v738_v8  ;;  %v739_v12 = vld [vmem:[#allocation2 + $0x170] sm:$0xff]  ;;  %v742_v14 = vld [vmem:[#allocation2 + $0x188] sm:$0xff]  ;;  %v744_v15 = vld [vmem:[#allocation2 + $0x198] sm:$0xff] }
  0x5b   :  { %v1520_v13 = vpack.c.bf16 %v739_v12, %v737_v11  ;;  %v1522_v16 = vpack.c.bf16 %v744_v15, %v742_v14  ;;  %v741_v17 = vld [vmem:[#allocation2 + $0x180] sm:$0xff]  ;;  %v743_v18 = vld [vmem:[#allocation2 + $0x190] sm:$0xff]  ;;  %v746_v20 = vld [vmem:[#allocation2 + $0x1a8] sm:$0xff] }
  0x5c   :  { %1489 = vmatpush1.bf16.msra.mxu0 %v1488_v29  ;;  %v1524_v19 = vpack.c.bf16 %v743_v18, %v741_v17  ;;  %v748_v21 = vld [vmem:[#allocation2 + $0x1b8] sm:$0xff]  ;;  %v745_v23 = vld [vmem:[#allocation2 + $0x1a0] sm:$0xff]  ;;  %v747_v24 = vld [vmem:[#allocation2 + $0x1b0] sm:$0xff] }
  0x5d   :  { %1491 = vmatprep.subr.bf16.mxu0 %v1490_v32  ;;  %v1526_v22 = vpack.c.bf16 %v748_v21, %v746_v20  ;;  %v750_v25 = vld [vmem:[#allocation2 + $0x1c8] sm:$0xff]  ;;  %v1528_v26 = vpack.c.bf16 %v747_v24, %v745_v23  ;;  %v752_v27 = vld [vmem:[#allocation2 + $0x1d8] sm:$0xff]  ;;  %v749_v28 = vld [vmem:[#allocation2 + $0x1c0] sm:$0xff]  ;;  %v1930_v21 = vmov 683565275  }
  0x5e   :  { %v751_v29 = vld [vmem:[#allocation2 + $0x1d0] sm:$0xff]  ;;  %v1530_v30 = vpack.c.bf16 %v752_v27, %v750_v25  ;;  %v754_v31 = vld [vmem:[#allocation2 + $0x1e8] sm:$0xff]  ;;  %v756_v32 = vld [vmem:[#allocation2 + $0x1f8] sm:$0xff]  ;;  %v1931_v23 = vmov 2475754826  }
  0x5f   :  { %v1532_v33 = vpack.c.bf16 %v751_v29, %v749_v28  ;;  %v1534_v34 = vpack.c.bf16 %v756_v32, %v754_v31  ;;  %v755_v36 = vld [vmem:[#allocation2 + $0x1f0] sm:$0xff]  ;;  %v758_v51 = vld [vmem:[#allocation2 + $0x208] sm:$0xff]  ;;  %v760_v52 = vld [vmem:[#allocation2 + $0x218] sm:$0xff]  ;;  %v1932_v27 = vmov 2131351028  }
  0x60   :  { %1493 = vmatpush1.bf16.msra.mxu0 %v1492_v35  ;;  %v753_v35 = vld [vmem:[#allocation2 + $0x1e0] sm:$0xff]  ;;  %v1538_v54 = vpack.c.bf16 %v760_v52, %v758_v51 }
  0x61   :  { %1495 = vmatprep.subr.bf16.mxu0 %v1494_v38  ;;  %v1536_v37 = vpack.c.bf16 %v755_v36, %v753_v35  ;;  %v98_v38 = vlaneseq  ;;  %v1935_v36 = vmov 1326507024  }
  0x63   :  { %v99_v39 = vshrl.u32 %v98_v38, 7 }
  0x64   :  { %1497 = vmatpush1.bf16.msra.mxu0 %v1496_v41  ;;  %v96_v41 = vld [vmem:[%s2425_s2] sm:$0xf] }
  0x65   :  { %1499 = vmatprep.subr.bf16.mxu0 %v1498_v44  ;;  %v2076_v40 = vsub.s32 0, %v99_v39  ;;  %v2081_v42 = vsub.s32 1, %v99_v39  ;;  %v108_v44 = vsub.s32 2, %v99_v39  ;;  %v112_v46 = vsub.s32 3, %v99_v39 }
  0x67   :  { %v101_v43 = vrot.slane %v96_v41, %v2076_v40  ;;  %v105_v45 = vrot.slane %v96_v41, %v2081_v42  ;;  %v113_v57 = vrot.slane %v96_v41, %v112_v46 }
  0x68   :  { %1501 = vmatpush1.bf16.msra.mxu0 %v1500_v47 }
  0x69   :  { %1503 = vmatprep.subr.bf16.mxu0 %v1502_v50  ;;  %v109_v50 = vrot.slane %v96_v41, %v108_v44 }
  0x6c   :  { %1505 = vmatpush1.bf16.msra.mxu0 %v1504_v53 }
  0x6d   :  { %1507 = vmatprep.subr.bf16.mxu0 %v1506_v56 }
  0x70   :  { %1509 = vmatpush1.bf16.msra.mxu0 %v1508_v59 }
  0x71   :  { %1511 = vmatprep.subr.bf16.mxu0 %v1510_v62 }
  0x74   :  { %1513 = vmatpush1.bf16.msra.mxu0 %v1512_v1 }
  0x75   :  { %1515 = vmatprep.subr.bf16.mxu0 %v1514_v4 }
  0x78   :  { %1517 = vmatpush1.bf16.msra.mxu0 %v1516_v7 }
  0x79   :  { %1519 = vmatprep.subr.bf16.mxu0 %v1518_v10 }
  0x7c   :  { %1521 = vmatpush1.bf16.msra.mxu0 %v1520_v13 }
  0x7d   :  { %1523 = vmatprep.subr.bf16.mxu0 %v1522_v16 }
  0x80   :  { %1525 = vmatpush1.bf16.msra.mxu0 %v1524_v19 }
  0x81   :  { %1527 = vmatprep.subr.bf16.mxu0 %v1526_v22 }
  0x84   :  { %1529 = vmatpush1.bf16.msra.mxu0 %v1528_v26 }
  0x85   :  { %1531 = vmatprep.subr.bf16.mxu0 %v1530_v30  ;;  %v1933_v30 = vmov 2102212464  }
  0x88   :  { %1533 = vmatpush1.bf16.msra.mxu0 %v1532_v33  ;;  %v1934_v33 = vmov 920167782  }
  0x89   :  { %1535 = vmatprep.subr.bf16.mxu0 %v1534_v34 }
  0x8c   :  { %1537 = vmatpush1.bf16.msra.mxu0 %v1536_v37 }
  0x8d   :  { %1539 = vmatprep.subr.bf16.mxu0 %v1538_v54 }
 0x121   :  { %v201_v47 = vpop.f32.mrb[0].mxu1 }
 0x122   :  { %v2085_v48 = vadd.f32 %v201_v47, %v101_v43  ;;  %v203_v49 = vpop.f32.mrb[1].mxu1 }
 0x123   :  { %v2087_v53 = vadd.f32 %v203_v49, %v105_v45 }
 0x124   :  { %v277_v55 = vand.u32 2147483647, %v2085_v48  ;;  %v280_v56 = vand.u32 2139095040, %v2085_v48 }
 0x125   :  { %v384_v58 = vand.u32 2139095040, %v2087_v53  ;;  %v272_v59 = vpop.f32.mrb[2].mxu1  ;;  %v381_v16 = vand.u32 2147483647, %v2087_v53 }
 0x126   :  { %v281_v60 = vshrl.u32 %v280_v56, 23  ;;  %v2092_v61 = vadd.f32 %v272_v59, %v109_v50  ;;  %v274_v62 = vpop.f32.mrb[3].mxu1  ;;  %v284_v63 = vand.u32 8388607, %v277_v55 }
 0x127   :  { %v385_v0 = vshrl.u32 %v384_v58, 23  ;;  %v2096_v2 = vadd.f32 %v274_v62, %v113_v57 }
 0x128   :  { %v1422_v1 = vadd.s32 4294967169, %v281_v60  ;;  %v488_v4 = vand.u32 2139095040, %v2092_v61  ;;  %v285_v6 = vor.u32 8388608, %v284_v63  ;;  %v485_v9 = vand.u32 2147483647, %v2092_v61 }
 0x129   :  { %v1426_v3 = vadd.s32 4294967169, %v385_v0  ;;  %v592_v10 = vand.u32 2139095040, %v2096_v2  ;;  %v589_v15 = vand.u32 2147483647, %v2096_v2 }
 0x12a   :  { %v287_v5 = vadd.s32 1, %v1422_v1  ;;  %v489_v7 = vshrl.u32 %v488_v4, 23  ;;  %v2101_v14 = vshll.u32 %v285_v6, 8  ;;  %v492_v18 = vand.u32 8388607, %v485_v9 }
 0x12b   :  { %v391_v8 = vadd.s32 1, %v1426_v3  ;;  %v593_v19 = vshrl.u32 %v592_v10, 23 }
 0x12c   :  { %vm288_vm2 = vcmp.gt.s32.totalorder %v287_v5, 0  ;;  %v1430_v12 = vadd.s32 4294967169, %v489_v7  ;;  %v493_v63 = vor.u32 8388608, %v492_v18  ;;  %v2130_v7 = vand.u32 8388607, %v589_v15 }
 0x12d   :  { %v289_v11 = vsel %vm288_vm2, %v287_v5, 0  ;;  %vm392_vm3 = vcmp.gt.s32.totalorder %v391_v8, 0  ;;  %v1434_v43 = vadd.s32 4294967169, %v593_v19 }
 0x12e   :  { %v291_v13 = vand.u32 31, %v289_v11  ;;  %v290_v20 = vshrl.u32 %v289_v11, 5  ;;  %v495_v25 = vadd.s32 1, %v1430_v12  ;;  %v393_v62 = vsel %vm392_vm3, %v391_v8, 0 }
 0x12f   :  { %v599_v10 = vadd.s32 1, %v1434_v43  ;;  %v2134_v8 = vand.u32 8388607, %v381_v16  ;;  %v2136_v11 = vand.u32 31, %v393_v62 }
 0x130   :  { %v292_v17 = vsub.s32 32, %v291_v13  ;;  %v294_v22 = vshll.u32 %v1930_v21, %v291_v13  ;;  %v297_v24 = vshll.u32 %v1931_v23, %v291_v13  ;;  %v300_v29 = vshll.u32 %v1932_v27, %v291_v13 }
 0x131   :  { %v303_v32 = vshll.u32 %v1933_v30, %v291_v13  ;;  %v306_v35 = vshll.u32 %v1934_v33, %v291_v13  ;;  %vm309_vm4 = vcmp.lt.s32.totalorder %v290_v20, 1  ;;  %vm312_vm5 = vcmp.lt.s32.totalorder %v290_v20, 4 }
 0x132   :  { %v295_v26 = vshrl.u32 %v1931_v23, %v292_v17  ;;  %v298_v28 = vshrl.u32 %v1932_v27, %v292_v17  ;;  %v301_v31 = vshrl.u32 %v1933_v30, %v292_v17  ;;  %v304_v34 = vshrl.u32 %v1934_v33, %v292_v17 }
 0x133   :  { %v307_v37 = vshrl.u32 %v1935_v36, %v292_v17  ;;  %v293_v46 = vshrl.u32 %v1930_v21, %v292_v17  ;;  %vm310_vm6 = vcmp.lt.s32.totalorder %v290_v20, 2  ;;  %vm311_vm7 = vcmp.lt.s32.totalorder %v290_v20, 3 }
 0x134   :  { %v296_v38 = vor.u32 %v295_v26, %v294_v22  ;;  %v299_v39 = vor.u32 %v298_v28, %v297_v24  ;;  %v302_v41 = vor.u32 %v301_v31, %v300_v29  ;;  %v305_v44 = vor.u32 %v304_v34, %v303_v32 }
 0x135   :  { %v308_v45 = vor.u32 %v307_v37, %v306_v35  ;;  %vm496_vm8 = vcmp.gt.s32.totalorder %v495_v25, 0  ;;  %v2138_v17 = vshll.u32 %v493_v63, 8  ;;  %vm600_vm10 = vcmp.gt.s32.totalorder %v599_v10, 0 }
 0x136   :  { %v314_v47 = vsel %vm312_vm5, %v302_v41, 2102212464  ;;  %v317_v49 = vsel %vm309_vm4, %v296_v38, %v299_v39  ;;  %v321_v50 = vsel %vm309_vm4, %v299_v39, %v302_v41  ;;  %v318_v51 = vsel %vm312_vm5, %v305_v44, 920167782 }
 0x137   :  { %v322_v52 = vsel %vm312_vm5, %v308_v45, 1326507024  ;;  %v313_v54 = vsel %vm309_vm4, %v293_v46, %v296_v38  ;;  %v315_v56 = vsel %vm311_vm7, %v299_v39, %v314_v47  ;;  %v319_v57 = vsel %vm311_vm7, %v302_v41, %v318_v51 }
 0x138   :  { %v323_v58 = vsel %vm311_vm7, %v305_v44, %v322_v52  ;;  %v320_v59 = vsel %vm310_vm6, %v317_v49, %v319_v57  ;;  %v316_v5 = vsel %vm310_vm6, %v313_v54, %v315_v56  ;;  %v497_v6 = vsel %vm496_vm8, %v495_v25, 0 }
 0x139   :  { %v324_v60 = vsel %vm310_vm6, %v321_v50, %v323_v58  ;;  %v2124_v3 = vmul.u32.u64.low %v2101_v14, %v320_v59  ;;  %v2125_v4 = vmul.u32.u64.high %v2101_v14, %v320_v59, %v2124_v3  ;;  %v498_v12 = vshrl.u32 %v497_v6, 5 }
 0x13a   :  { %v2120_v0 = vmul.u32.u64.low %v2101_v14, %v324_v60  ;;  %v2121_v1 = vmul.u32.u64.high %v2101_v14, %v324_v60, %v2120_v0  ;;  %v499_v13 = vand.u32 31, %v497_v6  ;;  %v332_v18 = vmul.u32 %v2101_v14, %v316_v5 }
 0x13b   :  { %v335_v19 = vadd.s32 1, %v2125_v4  ;;  %vm517_vm11 = vcmp.lt.s32.totalorder %v498_v12, 1  ;;  %vm518_vm12 = vcmp.lt.s32.totalorder %v498_v12, 2  ;;  %vm519_vm13 = vcmp.lt.s32.totalorder %v498_v12, 3 }
 0x13c   :  { %vm334_vm9 = vc.u32 %v2121_v1, %v2124_v3  ;;  %v500_v20 = vsub.s32 32, %v499_v13  ;;  %v502_v22 = vshll.u32 %v1930_v21, %v499_v13  ;;  %v505_v24 = vshll.u32 %v1931_v23, %v499_v13 }
 0x13d   :  { %v508_v25 = vshll.u32 %v1932_v27, %v499_v13  ;;  %v336_v26 = vsel %vm334_vm9, %v335_v19, %v2125_v4  ;;  %v511_v28 = vshll.u32 %v1933_v30, %v499_v13  ;;  %v514_v29 = vshll.u32 %v1934_v33, %v499_v13 }
 0x13e   :  { %v337_v14 = vadd.s32 %v336_v26, %v332_v18  ;;  %v501_v31 = vshrl.u32 %v1930_v21, %v500_v20  ;;  %v503_v32 = vshrl.u32 %v1931_v23, %v500_v20  ;;  %v506_v34 = vshrl.u32 %v1932_v27, %v500_v20 }
 0x13f   :  { %v509_v35 = vshrl.u32 %v1933_v30, %v500_v20  ;;  %v512_v37 = vshrl.u32 %v1934_v33, %v500_v20  ;;  %v515_v38 = vshrl.u32 %v1935_v36, %v500_v20  ;;  %vm520_vm14 = vcmp.lt.s32.totalorder %v498_v12, 4 }
 0x140   :  { %v338_v39 = vadd.s32 536870912, %v337_v14  ;;  %v504_v41 = vor.u32 %v503_v32, %v502_v22  ;;  %v507_v43 = vor.u32 %v506_v34, %v505_v24  ;;  %v601_v51 = vsel %vm600_vm10, %v599_v10, 0 }
 0x141   :  { %v510_v44 = vor.u32 %v509_v35, %v508_v25  ;;  %v513_v45 = vor.u32 %v512_v37, %v511_v28  ;;  %v516_v46 = vor.u32 %v515_v38, %v514_v29  ;;  %v2169_v6 = vshrl.u32 %v601_v51, 5 }
 0x142   :  { %v2156_v47 = vshrl.u32 %v338_v39, 30  ;;  %v521_v49 = vsel %vm517_vm11, %v501_v31, %v504_v41  ;;  %v525_v50 = vsel %vm517_vm11, %v504_v41, %v507_v43  ;;  %v2173_v13 = vshrl.u32 %v393_v62, 5 }
 0x143   :  { %v522_v52 = vsel %vm520_vm14, %v510_v44, 2102212464  ;;  %v526_v54 = vsel %vm520_vm14, %v513_v45, 920167782  ;;  %v529_v56 = vsel %vm517_vm11, %v507_v43, %v510_v44  ;;  %v530_v57 = vsel %vm520_vm14, %v516_v46, 1326507024 }
 0x144   :  { %v340_v58 = vshll.u32 %v2156_v47, 30  ;;  %v523_v59 = vsel %vm519_vm13, %v507_v43, %v522_v52  ;;  %v527_v60 = vsel %vm519_vm13, %v510_v44, %v526_v54  ;;  %v531_v63 = vsel %vm519_vm13, %v513_v45, %v530_v57 }
 0x145   :  { %v524_v0 = vsel %vm518_vm12, %v521_v49, %v523_v59  ;;  %v528_v4 = vsel %vm518_vm12, %v525_v50, %v527_v60  ;;  %v532_v5 = vsel %vm518_vm12, %v529_v56, %v531_v63  ;;  %v2180_v20 = vsub.s32 32, %v2136_v11 }
 0x146   :  { %v2171_v10 = vsub.s32 %v337_v14, %v340_v58  ;;  %v2176_v18 = vmul.u32.u64.low %v2138_v17, %v532_v5  ;;  %v2177_v19 = vmul.u32.u64.high %v2138_v17, %v532_v5, %v2176_v18  ;;  %v603_v25 = vand.u32 31, %v601_v51 }
 0x147   :  { %v2183_v22 = vmul.u32.u64.low %v2138_v17, %v528_v4  ;;  %v2184_v24 = vmul.u32.u64.high %v2138_v17, %v528_v4, %v2183_v22  ;;  %v540_v26 = vmul.u32 %v2138_v17, %v524_v0  ;;  %v597_v28 = vor.u32 8388608, %v2130_v7 }
 0x148   :  { %v343_v12 = vsub.s32 0, %v2171_v10  ;;  %vm621_vm15 = vcmp.lt.s32.totalorder %v2169_v6, 1  ;;  %v604_v62 = vsub.s32 32, %v603_v25  ;;  %v606_v29 = vshll.u32 %v1930_v21, %v603_v25 }
 0x149   :  { %v609_v14 = vshll.u32 %v1931_v23, %v603_v25  ;;  %vm623_vm0 = vcmp.lt.s32.totalorder %v2169_v6, 3  ;;  %v2194_v31 = vadd.s32 %v2183_v22, %v2177_v19  ;;  %vm542_vm1 = vc.u32 %v2177_v19, %v2183_v22 }
 0x14a   :  { %v612_v32 = vshll.u32 %v1932_v27, %v603_v25  ;;  %v615_v17 = vshll.u32 %v1933_v30, %v603_v25  ;;  %v1423_v7 = vmin.u32 %v343_v12, %v2171_v10  ;;  %v543_v34 = vadd.s32 1, %v2184_v24 }
 0x14b   :  { %v607_v35 = vshrl.u32 %v1931_v23, %v604_v62  ;;  %v610_v37 = vshrl.u32 %v1932_v27, %v604_v62  ;;  %v613_v38 = vshrl.u32 %v1933_v30, %v604_v62  ;;  %v616_v39 = vshrl.u32 %v1934_v33, %v604_v62 }
 0x14c   :  { %v618_v41 = vshll.u32 %v1934_v33, %v603_v25  ;;  %vm624_vm2 = vcmp.lt.s32.totalorder %v2169_v6, 4  ;;  %v544_v43 = vsel %vm542_vm1, %v543_v34, %v2184_v24  ;;  %v619_v46 = vshrl.u32 %v1935_v36, %v604_v62 }
 0x14d   :  { %v608_v44 = vor.u32 %v607_v35, %v606_v29  ;;  %v611_v45 = vor.u32 %v610_v37, %v609_v14  ;;  %v545_v49 = vadd.s32 %v544_v43, %v540_v26  ;;  %v605_v50 = vshrl.u32 %v1930_v21, %v604_v62 }
 0x14e   :  { %v614_v51 = vor.u32 %v613_v38, %v612_v32  ;;  %v617_v52 = vor.u32 %v616_v39, %v615_v17  ;;  %v345_v54 = vclz %v1423_v7  ;;  %v408_v56 = vshrl.u32 %v1934_v33, %v2180_v20 }
 0x14f   :  { %v620_v57 = vor.u32 %v619_v46, %v618_v41  ;;  %vm622_vm3 = vcmp.lt.s32.totalorder %v2169_v6, 2  ;;  %v546_v58 = vadd.s32 536870912, %v545_v49  ;;  %v629_v60 = vsel %vm621_vm15, %v608_v44, %v611_v45 }
 0x150   :  { %v626_v59 = vsel %vm624_vm2, %v614_v51, 2102212464  ;;  %v630_v63 = vsel %vm624_vm2, %v617_v52, 920167782  ;;  %v407_v0 = vshll.u32 %v1933_v30, %v2136_v11  ;;  %v411_v4 = vshrl.u32 %v1935_v36, %v2180_v20 }
 0x151   :  { %v631_v5 = vsel %vm623_vm0, %v614_v51, %v630_v63  ;;  %v637_v18 = vshll.u32 %v597_v28, 8  ;;  %v2225_v19 = vshrl.u32 %v546_v58, 30  ;;  %v625_v22 = vsel %vm621_vm15, %v605_v50, %v608_v44 }
 0x152   :  { %v627_v24 = vsel %vm623_vm0, %v611_v45, %v626_v59  ;;  %v633_v25 = vsel %vm621_vm15, %v611_v45, %v614_v51  ;;  %v409_v12 = vor.u32 %v408_v56, %v407_v0  ;;  %v410_v26 = vshll.u32 %v1934_v33, %v2136_v11 }
 0x153   :  { %v632_v36 = vsel %vm622_vm3, %v629_v60, %v631_v5  ;;  %v634_v28 = vsel %vm624_vm2, %v620_v57, 1326507024  ;;  %v1424_v62 = vadd.s32 4294967294, %v345_v54  ;;  %v548_v29 = vshll.u32 %v2225_v19, 30 }
 0x154   :  { %v635_v14 = vsel %vm623_vm0, %v617_v52, %v634_v28  ;;  %v399_v32 = vshrl.u32 %v1931_v23, %v2180_v20  ;;  %v628_v17 = vsel %vm622_vm3, %v625_v22, %v627_v24  ;;  %v412_v35 = vor.u32 %v411_v4, %v410_v26 }
 0x155   :  { %v636_v33 = vsel %vm622_vm3, %v633_v25, %v635_v14  ;;  %v2248_v7 = vmul.u32.u64.low %v637_v18, %v632_v36  ;;  %v2249_v34 = vmul.u32.u64.high %v637_v18, %v632_v36, %v2248_v7  ;;  %vm416_vm4 = vcmp.lt.s32.totalorder %v2173_v13, 4 }
 0x156   :  { %v549_v37 = vsub.s32 %v545_v49, %v548_v29  ;;  %v398_v38 = vshll.u32 %v1930_v21, %v2136_v11  ;;  %v2255_v39 = vmul.u32.u64.low %v637_v18, %v636_v33  ;;  %v2256_v41 = vmul.u32.u64.high %v637_v18, %v636_v33, %v2255_v39 }
 0x157   :  { %v401_v43 = vshll.u32 %v1931_v23, %v2136_v11  ;;  %v402_v6 = vshrl.u32 %v1932_v27, %v2180_v20  ;;  %vm1425_vm5 = vcmp.lt.s32.totalorder %v1424_v62, 0  ;;  %v644_v45 = vmul.u32 %v637_v18, %v628_v17 }
 0x158   :  { %v551_v44 = vsub.s32 0, %v549_v37  ;;  %v400_v46 = vor.u32 %v399_v32, %v398_v38  ;;  %v647_v50 = vadd.s32 1, %v2249_v34  ;;  %v404_v49 = vshll.u32 %v1932_v27, %v2136_v11 }
 0x159   :  { %v403_v51 = vor.u32 %v402_v6, %v401_v43  ;;  %v405_v52 = vshrl.u32 %v1933_v30, %v2180_v20  ;;  %v422_v54 = vsel %vm416_vm4, %v409_v12, 920167782  ;;  %v389_v56 = vor.u32 8388608, %v2134_v8 }
 0x15a   :  { %v1431_v23 = vmin.u32 %v551_v44, %v549_v37  ;;  %v2270_v57 = vsel %vm1425_vm5, 0, %v1424_v62  ;;  %v426_v58 = vsel %vm416_vm4, %v412_v35, 1326507024  ;;  %vm646_vm6 = vc.u32 %v2256_v41, %v2248_v7 }
 0x15b   :  { %v406_v59 = vor.u32 %v405_v52, %v404_v49  ;;  %v648_v27 = vsel %vm646_vm6, %v647_v50, %v2249_v34  ;;  %vm413_vm7 = vcmp.lt.s32.totalorder %v2173_v13, 1  ;;  %vm415_vm8 = vcmp.lt.s32.totalorder %v2173_v13, 3 }
 0x15c   :  { %v553_v60 = vclz %v1431_v23  ;;  %v649_v30 = vadd.s32 %v648_v27, %v644_v45  ;;  %v421_v11 = vsel %vm413_vm7, %v400_v46, %v403_v51  ;;  %v353_v0 = vsub.s32 4294967266, %v2270_v57 }
 0x15d   :  { %v423_v8 = vsel %vm415_vm8, %v406_v59, %v422_v54  ;;  %v425_v63 = vsel %vm413_vm7, %v403_v51, %v406_v59  ;;  %v397_v5 = vshrl.u32 %v1930_v21, %v2180_v20  ;;  %vm414_vm9 = vcmp.lt.s32.totalorder %v2173_v13, 2 }
 0x15e   :  { %v1432_v4 = vadd.s32 4294967294, %v553_v60  ;;  %v650_v18 = vadd.s32 536870912, %v649_v30  ;;  %v418_v22 = vsel %vm416_vm4, %v406_v59, 2102212464  ;;  %v427_v24 = vsel %vm415_vm8, %v409_v12, %v426_v58 }
 0x15f   :  { %v429_v25 = vshll.u32 %v389_v56, 8  ;;  %v417_v26 = vsel %vm413_vm7, %v397_v5, %v400_v46  ;;  %v424_v36 = vsel %vm414_vm9, %v421_v11, %v423_v8  ;;  %v428_v28 = vsel %vm414_vm9, %v425_v63, %v427_v24 }
 0x160   :  { %vm1433_vm10 = vcmp.lt.s32.totalorder %v1432_v4, 0  ;;  %v2293_v21 = vshrl.u32 %v650_v18, 30  ;;  %v419_v12 = vsel %vm415_vm8, %v403_v51, %v418_v22  ;;  %v354_v44 = vadd.s32 127, %v353_v0 }
 0x161   :  { %v556_v62 = vsel %vm1433_vm10, 0, %v1432_v4  ;;  %v2295_v20 = vmul.u32.u64.low %v429_v25, %v428_v28  ;;  %v2296_v29 = vmul.u32.u64.high %v429_v25, %v428_v28, %v2295_v20  ;;  %v420_v6 = vsel %vm414_vm9, %v417_v26, %v419_v12 }
 0x162   :  { %v557_v14 = vsub.s32 32, %v556_v62  ;;  %v558_v32 = vshll.u32 %v549_v37, %v556_v62  ;;  %v561_v17 = vsub.s32 4294967266, %v556_v62  ;;  %v652_v33 = vshll.u32 %v2293_v21, 30 }
 0x163   :  { %v2301_v34 = vmul.u32.u64.low %v429_v25, %v424_v36  ;;  %v2302_v35 = vmul.u32.u64.high %v429_v25, %v424_v36, %v2301_v34  ;;  %v349_v51 = vsub.s32 32, %v2270_v57  ;;  %v436_v54 = vmul.u32 %v429_v25, %v420_v6 }
 0x164   :  { %v559_v38 = vshrl.u32 %v2194_v31, %v557_v14  ;;  %v562_v39 = vadd.s32 127, %v561_v17  ;;  %v653_v43 = vsub.s32 %v649_v30, %v652_v33  ;;  %v333_v13 = vadd.s32 %v2124_v3, %v2121_v1 }
 0x165   :  { %vm438_vm11 = vc.u32 %v2296_v29, %v2301_v34  ;;  %v439_v50 = vadd.s32 1, %v2302_v35  ;;  %v355_v56 = vshll.u32 %v354_v44, 23  ;;  %v350_v63 = vshll.u32 %v2171_v10, %v2270_v57 }
 0x166   :  { %v560_v45 = vor.u32 %v559_v38, %v558_v32  ;;  %v563_v37 = vshll.u32 %v562_v39, 23  ;;  %v655_v46 = vsub.s32 0, %v653_v43  ;;  %v351_v27 = vshrl.u32 %v333_v13, %v349_v51 }
 0x167   :  { %v440_v23 = vsel %vm438_vm11, %v439_v50, %v2302_v35  ;;  %v356_v0 = vor.u32 4788187, %v355_v56  ;;  %v645_v18 = vadd.s32 %v2248_v7, %v2256_v41  ;;  %vm487_vm13 = vcmp.lt.s32.totalorder %v2092_v61, 0 }
 0x168   :  { %v564_v49 = vor.u32 4788187, %v563_v37  ;;  %v567_v52 = vcvt.s32.f32 %v560_v45  ;;  %v1435_v31 = vmin.u32 %v655_v46, %v653_v43  ;;  %v441_v59 = vadd.s32 %v440_v23, %v436_v54  ;;  %v986_v54 = vld [vmem:[#allocation4 + $0x8] sm:$0xff] }
 0x169   :  { %v352_v1 = vor.u32 %v351_v27, %v350_v63  ;;  %v357_v36 = vand.u32 2147483647, %v356_v0  ;;  %vm2327_vm14 = vcmp.le.f32.partialorder %v485_v9, 0.7853982  ;;  %vm279_vm0 = vcmp.lt.s32.totalorder %v2085_v48, 0 }
 0x16a   :  { %v565_v58 = vand.u32 2147483647, %v564_v49  ;;  %v657_v60 = vclz %v1435_v31  ;;  %v442_v11 = vadd.s32 536870912, %v441_v59  ;;  %vm591_vm1 = vcmp.lt.s32.totalorder %v2096_v2, 0 }
 0x16b   :  { %v359_v20 = vcvt.s32.f32 %v352_v1  ;;  %v437_v50 = vadd.s32 %v2301_v34, %v2296_v29  ;;  %vm2344_vm2 = vcmp.le.f32.partialorder %v277_v55, 0.7853982  ;;  %vm2353_vm3 = vcmp.le.f32.partialorder %v589_v15, 0.7853982  ;;  %v992_v55 = vld [vmem:[#allocation4 + $0x38] sm:$0xff] }
 0x16c   :  { %v568_v30 = vmul.f32 %v567_v52, %v565_v58  ;;  %v1436_v8 = vadd.s32 4294967294, %v657_v60  ;;  %v2317_v5 = vshrl.u32 %v442_v11, 30  ;;  %v988_v58 = vld [vmem:[#allocation4 + $0x18] sm:$0xff]  ;;  %v987_v60 = vld [vmem:[#allocation4 + $0x10] sm:$0xff]  ;;  %v571_v27 = vsub.s32 4, %v2225_v19 }
 0x16d   :  { %v360_v12 = vmul.f32 %v359_v20, %v357_v36  ;;  %v1602_v1 = vpack.c.bf16 %v988_v58, %v986_v54  ;;  %vm383_vm7 = vcmp.lt.s32.totalorder %v2087_v53, 0  ;;  %vm2380_vm8 = vcmp.le.f32.partialorder %v381_v16, 0.7853982 }
 0x16e   :  { %v569_v4 = vxor.u32 2147483648, %v568_v30  ;;  %vm1437_vm12 = vcmp.lt.s32.totalorder %v1436_v8, 0  ;;  %v444_v22 = vshll.u32 %v2317_v5, 30  ;;  %v572_v15 = vsel %vm487_vm13, %v571_v27, %v2225_v19 }
 0x16f   :  { %v660_v3 = vsel %vm1437_vm12, 0, %v1436_v8  ;;  %v361_v6 = vxor.u32 2147483648, %v360_v12  ;;  %1603 = vmatprep.subr.bf16.mxu1 %v1602_v1 }
 0x170   :  { %v661_v24 = vsub.s32 32, %v660_v3  ;;  %v662_v25 = vshll.u32 %v653_v43, %v660_v3  ;;  %v665_v26 = vsub.s32 4294967266, %v660_v3  ;;  %v570_v10 = vsel %vm487_vm13, %v569_v4, %v568_v30  ;;  %v990_v30 = vld [vmem:[#allocation4 + $0x28] sm:$0xff] }
 0x171   :  { %v445_v57 = vsub.s32 %v441_v59, %v444_v22  ;;  %v573_v14 = vsel %vm2327_vm14, %v2092_v61, %v570_v10  ;;  %v362_v46 = vsel %vm279_vm0, %v361_v6, %v360_v12  ;;  %v985_v59 = vld [vmem:[#allocation4] sm:$0xff]  ;;  %v1606_v36 = vpack.c.bf16 %v992_v55, %v990_v30  ;;  %v994_v10 = vld [vmem:[#allocation4 + $0x48] sm:$0xff]  ;;  %v995_v12 = vld [vmem:[#allocation4 + $0x50] sm:$0xff] }
 0x172   :  { %v663_v28 = vshrl.u32 %v645_v18, %v661_v24  ;;  %v666_v62 = vadd.s32 127, %v665_v26  ;;  %1799 = vsinq.f32 %v573_v14  ;;  %v365_v29 = vsel %vm2344_vm2, %v2085_v48, %v362_v46  ;;  %v989_v22 = vld [vmem:[#allocation4 + $0x20] sm:$0xff]  ;;  %v991_v24 = vld [vmem:[#allocation4 + $0x30] sm:$0xff]  ;;  %v1000_v6 = vld [vmem:[#allocation4 + $0x78] sm:$0xff] }
 0x173   :  { %v447_v41 = vsub.s32 0, %v445_v57  ;;  %1801 = vcosq.f32 %v573_v14  ;;  %v363_v18 = vsub.s32 4, %v2156_v47  ;;  %v1604_v3 = vpack.c.bf16 %v987_v60, %v985_v59  ;;  %v1001_v30 = vld [vmem:[#allocation4 + $0x80] sm:$0xff]  ;;  %v1003_v55 = vld [vmem:[#allocation4 + $0x90] sm:$0xff] }
 0x174   :  { %v664_v32 = vor.u32 %v663_v28, %v662_v25  ;;  %v667_v17 = vshll.u32 %v666_v62, 23  ;;  %1803 = vcosq.f32 %v365_v29  ;;  %v574_v26 = vsel %vm2327_vm14, 0, %v572_v15 }
 0x175   :  { %v1427_v33 = vmin.u32 %v447_v41, %v445_v57  ;;  %v675_v28 = vsub.s32 4, %v2293_v21  ;;  %v578_v62 = vadd.s32 3, %v574_v26  ;;  %1605 = vmatpush1.bf16.msra.mxu1 %v1604_v3  ;;  %v1005_v3 = vld [vmem:[#allocation4 + $0xa0] sm:$0xff] }
 0x176   :  { %v668_v35 = vor.u32 4788187, %v667_v17  ;;  %v671_v38 = vcvt.s32.f32 %v664_v32  ;;  %v1608_v32 = vpack.c.bf16 %v991_v24, %v989_v22  ;;  %v993_v17 = vld [vmem:[#allocation4 + $0x40] sm:$0xff]  ;;  %1607 = vmatprep.subr.bf16.mxu1 %v1606_v36  ;;  %v1007_v22 = vld [vmem:[#allocation4 + $0xb0] sm:$0xff]  ;;  %v1010_v36 = vld [vmem:[#allocation4 + $0xc8] sm:$0xff] }
 0x177   :  { %v449_v39 = vclz %v1427_v33  ;;  %v579_v33 = vand.u32 3, %v578_v62 }
 0x178   :  { %v669_v43 = vand.u32 2147483647, %v668_v35 }
 0x179   :  { %v1428_v9 = vadd.s32 4294967294, %v449_v39  ;;  %v364_v39 = vsel %vm279_vm0, %v363_v18, %v2156_v47  ;;  %vm581_vm4 = vcmp.eq.s32.totalorder %v579_v33, 0  ;;  %vm584_vm5 = vcmp.eq.s32.totalorder %v579_v33, 2  ;;  %1609 = vmatpush1.bf16.msra.mxu1 %v1608_v32 }
 0x17a   :  { %v672_v44 = vmul.f32 %v671_v38, %v669_v43  ;;  %v467_v38 = vsub.s32 4, %v2317_v5  ;;  %v998_v43 = vld [vmem:[#allocation4 + $0x68] sm:$0xff]  ;;  %vm580_vm6 = vcmp.lt.s32.totalorder %v579_v33, 2  ;;  %v366_v59 = vsel %vm2344_vm2, 0, %v364_v39 }
 0x17b   :  { %vm1429_vm15 = vcmp.lt.s32.totalorder %v1428_v9, 0  ;;  %v1614_v47 = vpack.c.bf16 %v1000_v6, %v998_v43  ;;  %v1620_v18 = vpack.c.bf16 %v1003_v55, %v1001_v30  ;;  %v1014_v33 = vld [vmem:[#allocation4 + $0xe8] sm:$0xff]  ;;  %vm369_vm2 = vweird.f32 %v2085_v48  ;;  %v772_v48 = vld [vmem:[#allocation2 + $0x278] sm:$0xff] }
 0x17c   :  { %v673_v45 = vxor.u32 2147483648, %v672_v44  ;;  %v452_v37 = vsel %vm1429_vm15, 0, %v1428_v9  ;;  %v1800_v11 = vpop.eup %1799  ;;  %v676_v9 = vsel %vm591_vm1, %v675_v28, %v2293_v21  ;;  %v468_v54 = vsel %vm383_vm7, %v467_v38, %v2317_v5  ;;  %v1013_v21 = vld [vmem:[#allocation4 + $0xe0] sm:$0xff] }
 0x17d   :  { %v453_v51 = vsub.s32 32, %v452_v37  ;;  %v457_v49 = vsub.s32 4294967266, %v452_v37  ;;  %v454_v31 = vshll.u32 %v445_v57, %v452_v37  ;;  %v1802_v4 = vpop.eup %1801  ;;  %v996_v57 = vld [vmem:[#allocation4 + $0x58] sm:$0xff]  ;;  %v582_v20 = vxor.u32 2147483648, %v1800_v11 }
 0x17e   :  { %v674_v52 = vsel %vm591_vm1, %v673_v45, %v672_v44  ;;  %v585_v14 = vxor.u32 2147483648, %v1802_v4  ;;  %v1610_v7 = vpack.c.bf16 %v996_v57, %v994_v10  ;;  %v1612_v44 = vpack.c.bf16 %v995_v12, %v993_v17  ;;  %v1804_v60 = vpop.eup %1803  ;;  %v1012_v10 = vld [vmem:[#allocation4 + $0xd8] sm:$0xff] }
 0x17f   :  { %v455_v23 = vshrl.u32 %v437_v50, %v453_v51  ;;  %v458_v13 = vadd.s32 127, %v457_v49  ;;  %v677_v0 = vsel %vm2353_vm3, %v2096_v2, %v674_v52  ;;  %v583_v37 = vsel %vm581_vm4, %v1802_v4, %v582_v20  ;;  %v997_v51 = vld [vmem:[#allocation4 + $0x60] sm:$0xff]  ;;  %v999_v49 = vld [vmem:[#allocation4 + $0x70] sm:$0xff] }
 0x180   :  { %1805 = vcosq.f32 %v677_v0  ;;  %v586_v46 = vsel %vm584_vm5, %v585_v14, %v1800_v11  ;;  %1611 = vmatprep.subr.bf16.mxu1 %v1610_v7  ;;  %v1616_v16 = vpack.c.bf16 %v999_v49, %v997_v51  ;;  %v470_v5 = vsel %vm2380_vm8, 0, %v468_v54  ;;  %v1011_v14 = vld [vmem:[#allocation4 + $0xd0] sm:$0xff]  ;;  %v1016_v7 = vld [vmem:[#allocation4 + $0xf8] sm:$0xff] }
 0x181   :  { %v456_v8 = vor.u32 %v455_v23, %v454_v31  ;;  %v459_v63 = vshll.u32 %v458_v13, 23  ;;  %1807 = vsinq.f32 %v677_v0  ;;  %v2376_v50 = vsel %vm580_vm6, %v583_v37, %v586_v46  ;;  %v1002_v23 = vld [vmem:[#allocation4 + $0x88] sm:$0xff]  ;;  %v1004_v13 = vld [vmem:[#allocation4 + $0x98] sm:$0xff]  ;;  %1613 = vmatpush1.bf16.msra.mxu1 %v1612_v44  ;;  %v759_v44 = vld [vmem:[#allocation2 + $0x210] sm:$0xff] }
 0x182   :  { %1809 = vsinq.f32 %v365_v29  ;;  %v678_v31 = vsel %vm2353_vm3, 0, %v676_v9  ;;  %1615 = vmatprep.subr.bf16.mxu1 %v1614_v47  ;;  %v1618_v27 = vpack.c.bf16 %v1004_v13, %v1002_v23  ;;  %v370_v11 = vadd.s32 3, %v366_v59  ;;  %v757_v9 = vld [vmem:[#allocation2 + $0x200] sm:$0xff]  ;;  %v764_v47 = vld [vmem:[#allocation2 + $0x238] sm:$0xff]  ;;  %v1018_v23 = vld [vmem:[#allocation4 + $0x108] sm:$0xff] }
 0x183   :  { %v460_v25 = vor.u32 4788187, %v459_v63  ;;  %v463_v19 = vcvt.s32.f32 %v456_v8  ;;  %v682_v34 = vadd.s32 3, %v678_v31  ;;  %v1006_v8 = vld [vmem:[#allocation4 + $0xa8] sm:$0xff]  ;;  %v1008_v63 = vld [vmem:[#allocation4 + $0xb8] sm:$0xff]  ;;  %v474_v4 = vadd.s32 3, %v470_v5 }
 0x184   :  { %v1622_v1 = vpack.c.bf16 %v1008_v63, %v1006_v8  ;;  %v371_v24 = vand.u32 3, %v370_v11  ;;  %v377_v28 = vxor.u32 2147483648, %v1804_v60  ;;  %v1624_v20 = vpack.c.bf16 %v1007_v22, %v1005_v3  ;;  %v1020_v13 = vld [vmem:[#allocation4 + $0x118] sm:$0xff]  ;;  %v761_v5 = vld [vmem:[#allocation2 + $0x220] sm:$0xff]  ;;  %v1019_v63 = vld [vmem:[#allocation4 + $0x110] sm:$0xff] }
 0x185   :  { %v461_v41 = vand.u32 2147483647, %v460_v25  ;;  %1617 = vmatpush1.bf16.msra.mxu1 %v1616_v16  ;;  %v683_v15 = vand.u32 3, %v682_v34  ;;  %v475_v62 = vand.u32 3, %v474_v4  ;;  %v1630_v49 = vpack.c.bf16 %v1016_v7, %v1014_v33  ;;  %v763_v34 = vld [vmem:[#allocation2 + $0x230] sm:$0xff]  ;;  %v768_v11 = vld [vmem:[#allocation2 + $0x258] sm:$0xff] }
 0x186   :  { %1619 = vmatprep.subr.bf16.mxu1 %v1618_v27  ;;  %vm373_vm11 = vcmp.eq.s32.totalorder %v371_v24, 0  ;;  %vm376_vm12 = vcmp.eq.s32.totalorder %v371_v24, 2  ;;  %vm372_vm13 = vcmp.lt.s32.totalorder %v371_v24, 2  ;;  %vm473_vm3 = vweird.f32 %v2087_v53  ;;  %v766_v27 = vld [vmem:[#allocation2 + $0x248] sm:$0xff]  ;;  %v1021_v24 = vld [vmem:[#allocation4 + $0x120] sm:$0xff] }
 0x187   :  { %v464_v35 = vmul.f32 %v463_v19, %v461_v41  ;;  %vm685_vm9 = vcmp.eq.s32.totalorder %v683_v15, 0  ;;  %vm688_vm10 = vcmp.eq.s32.totalorder %v683_v15, 2  ;;  %v1626_v41 = vpack.c.bf16 %v1012_v10, %v1010_v36  ;;  %v1009_v19 = vld [vmem:[#allocation4 + $0xc0] sm:$0xff]  ;;  %v1028_v36 = vld [vmem:[#allocation4 + $0x158] sm:$0xff] }
 0x188   :  { %vm480_vm14 = vcmp.eq.s32.totalorder %v475_v62, 2  ;;  %vm684_vm15 = vcmp.lt.s32.totalorder %v683_v15, 2  ;;  %v1628_v37 = vpack.c.bf16 %v1011_v14, %v1009_v19  ;;  %vm477_vm0 = vcmp.eq.s32.totalorder %v475_v62, 0  ;;  %v767_v15 = vld [vmem:[#allocation2 + $0x250] sm:$0xff]  ;;  %v776_v19 = vld [vmem:[#allocation2 + $0x298] sm:$0xff]  ;;  %v773_v7 = vld [vmem:[#allocation2 + $0x280] sm:$0xff] }
 0x189   :  { %v465_v45 = vxor.u32 2147483648, %v464_v35  ;;  %1621 = vmatpush1.bf16.msra.mxu1 %v1620_v18  ;;  %vm476_vm1 = vcmp.lt.s32.totalorder %v475_v62, 2  ;;  %v1540_v59 = vpack.c.bf16 %v759_v44, %v757_v9  ;;  %vm681_vm4 = vweird.f32 %v2096_v2  ;;  %v1024_v2 = vld [vmem:[#allocation4 + $0x138] sm:$0xff]  ;;  %v765_v18 = vld [vmem:[#allocation2 + $0x240] sm:$0xff]  ;;  %v771_v62 = vld [vmem:[#allocation2 + $0x270] sm:$0xff] }
 0x18a   :  { %v1806_v29 = vpop.eup %1805  ;;  %1623 = vmatprep.subr.bf16.mxu1 %v1622_v1  ;;  %v1634_v8 = vpack.c.bf16 %v1020_v13, %v1018_v23  ;;  %v1546_v4 = vpack.c.bf16 %v768_v11, %v766_v27  ;;  %v770_v1 = vld [vmem:[#allocation2 + $0x268] sm:$0xff]  ;;  %v1548_v10 = vpack.c.bf16 %v767_v15, %v765_v18  ;;  %v777_v44 = vld [vmem:[#allocation2 + $0x2a0] sm:$0xff]  ;;  %v799_v18 = vld [vmem:[#allocation2 + $0x350] sm:$0xff]  ;;  %vm577_vm5 = vweird.f32 %v2092_v61 }
 0x18b   :  { %v466_v52 = vsel %vm383_vm7, %v465_v45, %v464_v35  ;;  %v1808_v0 = vpop.eup %1807  ;;  %v689_v26 = vxor.u32 2147483648, %v1806_v29  ;;  %v762_v45 = vld [vmem:[#allocation2 + $0x228] sm:$0xff]  ;;  %v785_v13 = vld [vmem:[#allocation2 + $0x2e0] sm:$0xff] }
 0x18c   :  { %v469_v58 = vsel %vm2380_vm8, %v2087_v53, %v466_v52  ;;  %v1810_v56 = vpop.eup %1809  ;;  %v686_v25 = vxor.u32 2147483648, %v1808_v0  ;;  %v1015_v52 = vld [vmem:[#allocation4 + $0xf0] sm:$0xff]  ;;  %v1542_v16 = vpack.c.bf16 %v764_v47, %v762_v45  ;;  %v1017_v53 = vld [vmem:[#allocation4 + $0x100] sm:$0xff]  ;;  %v794_v27 = vld [vmem:[#allocation2 + $0x328] sm:$0xff] }
 0x18d   :  { %1811 = vcosq.f32 %v469_v58  ;;  %v374_v57 = vxor.u32 2147483648, %v1810_v56  ;;  %v690_v12 = vsel %vm688_vm10, %v689_v26, %v1808_v0  ;;  %v378_v43 = vsel %vm376_vm12, %v377_v28, %v1810_v56  ;;  %1625 = vmatpush1.bf16.msra.mxu1 %v1624_v20  ;;  %v1022_v0 = vld [vmem:[#allocation4 + $0x128] sm:$0xff]  ;;  %v769_v28 = vld [vmem:[#allocation2 + $0x260] sm:$0xff]  ;;  %v779_v45 = vld [vmem:[#allocation2 + $0x2b0] sm:$0xff] }
 0x18e   :  { %1813 = vsinq.f32 %v469_v58  ;;  %v687_v17 = vsel %vm685_vm9, %v1806_v29, %v686_v25  ;;  %1627 = vmatprep.subr.bf16.mxu1 %v1626_v41  ;;  %v1632_v30 = vpack.c.bf16 %v1015_v52, %v1013_v21  ;;  %v1544_v56 = vpack.c.bf16 %v763_v34, %v761_v5  ;;  %v1023_v25 = vld [vmem:[#allocation4 + $0x130] sm:$0xff]  ;;  %v1026_v26 = vld [vmem:[#allocation4 + $0x148] sm:$0xff]  ;;  %v789_v5 = vld [vmem:[#allocation2 + $0x300] sm:$0xff] }
 0x18f   :  { %v375_v39 = vsel %vm373_vm11, %v1804_v60, %v374_v57  ;;  %v691_v51 = vsel %vm684_vm15, %v687_v17, %v690_v12  ;;  %v1636_v3 = vpack.c.bf16 %v1019_v63, %v1017_v53  ;;  %v1638_v22 = vpack.c.bf16 %v1024_v2, %v1022_v0  ;;  %v774_v20 = vld [vmem:[#allocation2 + $0x288] sm:$0xff]  ;;  %v1027_v17 = vld [vmem:[#allocation4 + $0x150] sm:$0xff]  ;;  %v800_v0 = vld [vmem:[#allocation2 + $0x358] sm:$0xff] }
 0x190   :  { %v379_v31 = vsel %vm372_vm13, %v375_v39, %v378_v43  ;;  %v692_v29 = vsel %vm681_vm4, nan, %v691_v51  ;;  %v1550_v57 = vpack.c.bf16 %v772_v48, %v770_v1  ;;  %v1640_v41 = vpack.c.bf16 %v1023_v25, %v1021_v24  ;;  %v778_v39 = vld [vmem:[#allocation2 + $0x2a8] sm:$0xff]  ;;  %v780_v43 = vld [vmem:[#allocation2 + $0x2b8] sm:$0xff]  ;;  %v783_v21 = vld [vmem:[#allocation2 + $0x2d0] sm:$0xff] }
 0x191   :  { %1629 = vmatpush1.bf16.msra.mxu1 %v1628_v37  ;;  %v380_v55 = vsel %vm369_vm2, nan, %v379_v31  ;;  %v1642_v14 = vpack.c.bf16 %v1028_v36, %v1026_v26  ;;  %v1552_v12 = vpack.c.bf16 %v771_v62, %v769_v28  ;;  %v1554_v33 = vpack.c.bf16 %v776_v19, %v774_v20  ;;  %v782_v37 = vld [vmem:[#allocation2 + $0x2c8] sm:$0xff]  ;;  %v791_v34 = vld [vmem:[#allocation2 + $0x310] sm:$0xff]  ;;  %v804_v1 = vld [vmem:[#allocation2 + $0x378] sm:$0xff] }
 0x192   :  { %1631 = vmatprep.subr.bf16.mxu1 %v1630_v49  ;;  %v1558_v9 = vpack.c.bf16 %v780_v43, %v778_v39  ;;  %v1560_v47 = vpack.c.bf16 %v779_v45, %v777_v44  ;;  %v781_v49 = vld [vmem:[#allocation2 + $0x2c0] sm:$0xff]  ;;  %v786_v52 = vld [vmem:[#allocation2 + $0x2e8] sm:$0xff]  ;;  %v795_v53 = vld [vmem:[#allocation2 + $0x330] sm:$0xff] }
 0x193   :  { %v1564_v31 = vpack.c.bf16 %v783_v21, %v781_v49  ;;  %v798_v63 = vld [vmem:[#allocation2 + $0x348] sm:$0xff]  ;;  %v803_v24 = vld [vmem:[#allocation2 + $0x370] sm:$0xff]  ;;  %v808_v26 = vld [vmem:[#allocation2 + $0x398] sm:$0xff] }
 0x194   :  { %v802_v15 = vld [vmem:[#allocation2 + $0x368] sm:$0xff]  ;;  %v807_v28 = vld [vmem:[#allocation2 + $0x390] sm:$0xff]  ;;  %v812_v20 = vld [vmem:[#allocation2 + $0x3b8] sm:$0xff] }
 0x195   :  { %1633 = vmatpush1.bf16.msra.mxu1 %v1632_v30  ;;  %v796_v30 = vld [vmem:[#allocation2 + $0x338] sm:$0xff]  ;;  %v1582_v48 = vpack.c.bf16 %v804_v1, %v802_v15  ;;  %v806_v25 = vld [vmem:[#allocation2 + $0x388] sm:$0xff]  ;;  %v817_v44 = vld [vmem:[#allocation2 + $0x3e0] sm:$0xff] }
 0x196   :  { %1635 = vmatprep.subr.bf16.mxu1 %v1634_v8  ;;  %v1574_v11 = vpack.c.bf16 %v796_v30, %v794_v27  ;;  %v793_v8 = vld [vmem:[#allocation2 + $0x320] sm:$0xff]  ;;  %v810_v62 = vld [vmem:[#allocation2 + $0x3a8] sm:$0xff]  ;;  %v820_v43 = vld [vmem:[#allocation2 + $0x3f8] sm:$0xff] }
 0x197   :  { %v1812_v32 = vpop.eup %1811  ;;  %v1576_v2 = vpack.c.bf16 %v795_v53, %v793_v8  ;;  %v1590_v19 = vpack.c.bf16 %v812_v20, %v810_v62  ;;  %v818_v39 = vld [vmem:[#allocation2 + $0x3e8] sm:$0xff]  ;;  %v819_v45 = vld [vmem:[#allocation2 + $0x3f0] sm:$0xff]  ;;  %v1029_v21 = vld [vmem:[#allocation4 + $0x160] sm:$0xff] }
 0x198   :  { %v1814_v35 = vpop.eup %1813  ;;  %v481_v38 = vxor.u32 2147483648, %v1812_v32  ;;  %v1038_v61 = vld [vmem:[#allocation4 + $0x1a8] sm:$0xff]  ;;  %v1044_v30 = vld [vmem:[#allocation4 + $0x1d8] sm:$0xff]  ;;  %v1043_v8 = vld [vmem:[#allocation4 + $0x1d0] sm:$0xff] }
 0x199   :  { %v478_v6 = vxor.u32 2147483648, %v1814_v35  ;;  %1637 = vmatpush1.bf16.msra.mxu1 %v1636_v3  ;;  %v1042_v27 = vld [vmem:[#allocation4 + $0x1c8] sm:$0xff]  ;;  %v1145_v15 = vld [vmem:[#allocation6 + $0x18] sm:$0xff] }
 0x19a   :  { %v482_v46 = vsel %vm480_vm14, %v481_v38, %v1814_v35  ;;  %1639 = vmatprep.subr.bf16.mxu1 %v1638_v22  ;;  %v775_v35 = vld [vmem:[#allocation2 + $0x290] sm:$0xff]  ;;  %v801_v22 = vld [vmem:[#allocation2 + $0x360] sm:$0xff]  ;;  %v1046_v53 = vld [vmem:[#allocation4 + $0x1e8] sm:$0xff] }
 0x19b   :  { %v479_v54 = vsel %vm477_vm0, %v1812_v32, %v478_v6  ;;  %v1025_v32 = vld [vmem:[#allocation4 + $0x140] sm:$0xff]  ;;  %v1556_v6 = vpack.c.bf16 %v775_v35, %v773_v7  ;;  %v1584_v36 = vpack.c.bf16 %v803_v24, %v801_v22 }
 0x19c   :  { %v483_v58 = vsel %vm476_vm1, %v479_v54, %v482_v46  ;;  %v1644_v38 = vpack.c.bf16 %v1027_v17, %v1025_v32  ;;  %v784_v46 = vld [vmem:[#allocation2 + $0x2d8] sm:$0xff]  ;;  %v811_v32 = vld [vmem:[#allocation2 + $0x3b0] sm:$0xff]  ;;  %v814_v17 = vld [vmem:[#allocation2 + $0x3c8] sm:$0xff] }
 0x19d   :  { %v484_v60 = vsel %vm473_vm3, nan, %v483_v58  ;;  %1641 = vmatpush1.bf16.msra.mxu1 %v1640_v41  ;;  %v1562_v51 = vpack.c.bf16 %v784_v46, %v782_v37  ;;  %v788_v54 = vld [vmem:[#allocation2 + $0x2f8] sm:$0xff]  ;;  %v787_v58 = vld [vmem:[#allocation2 + $0x2f0] sm:$0xff]  ;;  %v813_v35 = vld [vmem:[#allocation2 + $0x3c0] sm:$0xff]  ;;  %v1600_v37 = vpack.c.bf16 %v819_v45, %v817_v44  ;;  %v588_v46 = vsel %vm577_vm5, nan, %v2376_v50 }
 0x19e   :  { %897 = vmatprep.mubr.f32.mxu0 %v484_v60  ;;  %1643 = vmatprep.subr.bf16.mxu1 %v1642_v14  ;;  %v1566_v23 = vpack.c.bf16 %v788_v54, %v786_v52  ;;  %v792_v60 = vld [vmem:[#allocation2 + $0x318] sm:$0xff]  ;;  %v809_v14 = vld [vmem:[#allocation2 + $0x3a0] sm:$0xff]  ;;  %v1031_v52 = vld [vmem:[#allocation4 + $0x170] sm:$0xff] }
 0x19f   :  { %898 = vmatmul.mubr.f32.vlgmr.msra.gmra.mrb[0].mxu0 %v380_v55  ;;  %v1572_v55 = vpack.c.bf16 %v791_v34, %v789_v5  ;;  %v1648_v54 = vpack.c.bf16 %v1031_v52, %v1029_v21  ;;  %v1039_v5 = vld [vmem:[#allocation4 + $0x1b0] sm:$0xff]  ;;  %v1151_v44 = vld [vmem:[#allocation6 + $0x48] sm:$0xff]  ;;  %v1153_v45 = vld [vmem:[#allocation6 + $0x58] sm:$0xff] }
 0x1a0   :  { %1541 = vmatpush1.bf16.msra.mxu0 %v1540_v59  ;;  %968 = vmatprep.mubr.f32.mxu0 %v692_v29  ;;  %v790_v59 = vld [vmem:[#allocation2 + $0x308] sm:$0xff]  ;;  %v1157_v21 = vld [vmem:[#allocation6 + $0x78] sm:$0xff] }
 0x1a1   :  { %1543 = vmatprep.subr.bf16.mxu0 %v1542_v16  ;;  %1645 = vmatpush1.bf16.msra.mxu1 %v1644_v38  ;;  %v1568_v16 = vpack.c.bf16 %v787_v58, %v785_v13  ;;  %v1570_v29 = vpack.c.bf16 %v792_v60, %v790_v59  ;;  %v815_v38 = vld [vmem:[#allocation2 + $0x3d0] sm:$0xff]  ;;  %v1033_v58 = vld [vmem:[#allocation4 + $0x180] sm:$0xff] }
 0x1a2   :  { %v1035_v59 = vld [vmem:[#allocation4 + $0x190] sm:$0xff] }
 0x1a3   :  { %v1652_v60 = vpack.c.bf16 %v1035_v59, %v1033_v58  ;;  %v1161_v58 = vld [vmem:[#allocation6 + $0x98] sm:$0xff] }
 0x1a4   :  { %1545 = vmatpush1.bf16.msra.mxu0 %v1544_v56  ;;  %v1578_v56 = vpack.c.bf16 %v800_v0, %v798_v63  ;;  %v1048_v63 = vld [vmem:[#allocation4 + $0x1f8] sm:$0xff] }
 0x1a5   :  { %1547 = vmatprep.subr.bf16.mxu0 %v1546_v4  ;;  %v797_v4 = vld [vmem:[#allocation2 + $0x340] sm:$0xff] }
 0x1a6   :  { %v1580_v3 = vpack.c.bf16 %v799_v18, %v797_v4  ;;  %v1047_v4 = vld [vmem:[#allocation4 + $0x1f0] sm:$0xff]  ;;  %v1143_v18 = vld [vmem:[#allocation6 + $0x8] sm:$0xff] }
 0x1a8   :  { %1549 = vmatpush1.bf16.msra.mxu0 %v1548_v10  ;;  %v1586_v10 = vpack.c.bf16 %v808_v26, %v806_v25 }
 0x1a9   :  { %1551 = vmatprep.subr.bf16.mxu0 %v1550_v57  ;;  %v805_v57 = vld [vmem:[#allocation2 + $0x380] sm:$0xff] }
 0x1aa   :  { %v1588_v41 = vpack.c.bf16 %v807_v28, %v805_v57 }
 0x1ac   :  { %1553 = vmatpush1.bf16.msra.mxu0 %v1552_v12  ;;  %v816_v12 = vld [vmem:[#allocation2 + $0x3d8] sm:$0xff] }
 0x1ad   :  { %1555 = vmatprep.subr.bf16.mxu0 %v1554_v33  ;;  %v1592_v33 = vpack.c.bf16 %v811_v32, %v809_v14  ;;  %v1594_v7 = vpack.c.bf16 %v816_v12, %v814_v17  ;;  %v1144_v14 = vld [vmem:[#allocation6 + $0x10] sm:$0xff]  ;;  %v1147_v12 = vld [vmem:[#allocation6 + $0x28] sm:$0xff] }
 0x1b0   :  { %1557 = vmatpush1.bf16.msra.mxu0 %v1556_v6  ;;  %v1596_v6 = vpack.c.bf16 %v815_v38, %v813_v35 }
 0x1b1   :  { %1559 = vmatprep.subr.bf16.mxu0 %v1558_v9  ;;  %v1598_v9 = vpack.c.bf16 %v820_v43, %v818_v39 }
 0x1b4   :  { %1561 = vmatpush1.bf16.msra.mxu0 %v1560_v47  ;;  %v1030_v47 = vld [vmem:[#allocation4 + $0x168] sm:$0xff] }
 0x1b5   :  { %1563 = vmatprep.subr.bf16.mxu0 %v1562_v51  ;;  %v1032_v51 = vld [vmem:[#allocation4 + $0x178] sm:$0xff] }
 0x1b6   :  { %v1646_v49 = vpack.c.bf16 %v1032_v51, %v1030_v47  ;;  %v1150_v47 = vld [vmem:[#allocation6 + $0x40] sm:$0xff]  ;;  %v1152_v51 = vld [vmem:[#allocation6 + $0x50] sm:$0xff] }
 0x1b7   :  { %v1676_v52 = vpack.c.bf16 %v1152_v51, %v1150_v47  ;;  %v1195_v51 = vld [vmem:[#allocation6 + $0x1a8] sm:$0xff] }
 0x1b8   :  { %1565 = vmatpush1.bf16.msra.mxu0 %v1564_v31  ;;  %1647 = vmatprep.subr.bf16.mxu1 %v1646_v49  ;;  %v1034_v31 = vld [vmem:[#allocation4 + $0x188] sm:$0xff] }
 0x1b9   :  { %1567 = vmatprep.subr.bf16.mxu0 %v1566_v23  ;;  %1649 = vmatpush1.bf16.msra.mxu1 %v1648_v54  ;;  %v1036_v23 = vld [vmem:[#allocation4 + $0x198] sm:$0xff]  ;;  %v1155_v49 = vld [vmem:[#allocation6 + $0x68] sm:$0xff] }
 0x1ba   :  { %v1650_v13 = vpack.c.bf16 %v1036_v23, %v1034_v31  ;;  %v1678_v54 = vpack.c.bf16 %v1157_v21, %v1155_v49  ;;  %v1154_v31 = vld [vmem:[#allocation6 + $0x60] sm:$0xff]  ;;  %v1156_v23 = vld [vmem:[#allocation6 + $0x70] sm:$0xff]  ;;  %v1197_v49 = vld [vmem:[#allocation6 + $0x1b8] sm:$0xff] }
 0x1bb   :  { %v1680_v59 = vpack.c.bf16 %v1156_v23, %v1154_v31  ;;  %v1718_v21 = vpack.c.bf16 %v1197_v49, %v1195_v51  ;;  %v1199_v23 = vld [vmem:[#allocation6 + $0x1c8] sm:$0xff]  ;;  %v1307_v51 = vld [vmem:[#allocation7 + $0x40] sm:$0xff] }
 0x1bc   :  { %1569 = vmatpush1.bf16.msra.mxu0 %v1568_v16  ;;  %1651 = vmatprep.subr.bf16.mxu1 %v1650_v13  ;;  %v1040_v16 = vld [vmem:[#allocation4 + $0x1b8] sm:$0xff]  ;;  %v1159_v13 = vld [vmem:[#allocation6 + $0x88] sm:$0xff] }
 0x1bd   :  { %1571 = vmatprep.subr.bf16.mxu0 %v1570_v29  ;;  %1653 = vmatpush1.bf16.msra.mxu1 %v1652_v60  ;;  %v1654_v50 = vpack.c.bf16 %v1040_v16, %v1038_v61  ;;  %v1037_v29 = vld [vmem:[#allocation4 + $0x1a0] sm:$0xff]  ;;  %v1682_v60 = vpack.c.bf16 %v1161_v58, %v1159_v13  ;;  %v1160_v16 = vld [vmem:[#allocation6 + $0x90] sm:$0xff]  ;;  %v1201_v13 = vld [vmem:[#allocation6 + $0x1d8] sm:$0xff] }
 0x1be   :  { %v1656_v34 = vpack.c.bf16 %v1039_v5, %v1037_v29  ;;  %v1158_v61 = vld [vmem:[#allocation6 + $0x80] sm:$0xff]  ;;  %v1165_v29 = vld [vmem:[#allocation6 + $0xb8] sm:$0xff]  ;;  %v1308_v49 = vld [vmem:[#allocation7 + $0x48] sm:$0xff] }
 0x1bf   :  { %1655 = vmatprep.subr.bf16.mxu1 %v1654_v50  ;;  %v1163_v50 = vld [vmem:[#allocation6 + $0xa8] sm:$0xff]  ;;  %v1684_v5 = vpack.c.bf16 %v1160_v16, %v1158_v61  ;;  %v1198_v58 = vld [vmem:[#allocation6 + $0x1c0] sm:$0xff]  ;;  %v1205_v16 = vld [vmem:[#allocation6 + $0x1f8] sm:$0xff] }
 0x1c0   :  { %1573 = vmatpush1.bf16.msra.mxu0 %v1572_v55  ;;  %v1041_v55 = vld [vmem:[#allocation4 + $0x1c0] sm:$0xff]  ;;  %v1203_v61 = vld [vmem:[#allocation6 + $0x1e8] sm:$0xff] }
 0x1c1   :  { %1575 = vmatprep.subr.bf16.mxu0 %v1574_v11  ;;  %v1658_v11 = vpack.c.bf16 %v1044_v30, %v1042_v27  ;;  %1657 = vmatpush1.bf16.msra.mxu1 %v1656_v34  ;;  %v1660_v0 = vpack.c.bf16 %v1043_v8, %v1041_v55  ;;  %v1686_v34 = vpack.c.bf16 %v1165_v29, %v1163_v50  ;;  %v1162_v27 = vld [vmem:[#allocation6 + $0xa0] sm:$0xff]  ;;  %v1164_v30 = vld [vmem:[#allocation6 + $0xb0] sm:$0xff]  ;;  %v1167_v55 = vld [vmem:[#allocation6 + $0xc8] sm:$0xff] }
 0x1c2   :  { %v1688_v8 = vpack.c.bf16 %v1164_v30, %v1162_v27  ;;  %v1726_v29 = vpack.c.bf16 %v1205_v16, %v1203_v61  ;;  %v1315_v27 = vld [vmem:[#allocation7 + $0x80] sm:$0xff]  ;;  %v1316_v30 = vld [vmem:[#allocation7 + $0x88] sm:$0xff] }
 0x1c3   :  { %1659 = vmatprep.subr.bf16.mxu1 %v1658_v11  ;;  %v1169_v11 = vld [vmem:[#allocation6 + $0xd8] sm:$0xff]  ;;  %v1311_v61 = vld [vmem:[#allocation7 + $0x60] sm:$0xff] }
 0x1c4   :  { %1577 = vmatpush1.bf16.msra.mxu0 %v1576_v2  ;;  %v1662_v2 = vpack.c.bf16 %v1048_v63, %v1046_v53  ;;  %v1690_v53 = vpack.c.bf16 %v1169_v11, %v1167_v55  ;;  %v1166_v63 = vld [vmem:[#allocation6 + $0xc0] sm:$0xff]  ;;  %v1730_v11 = vpack.c.bf16 %v1316_v30, %v1315_v27  ;;  %v1313_v30 = vld [vmem:[#allocation7 + $0x70] sm:$0xff] }
 0x1c5   :  { %1579 = vmatprep.subr.bf16.mxu0 %v1578_v56  ;;  %v1045_v56 = vld [vmem:[#allocation4 + $0x1e0] sm:$0xff]  ;;  %1661 = vmatpush1.bf16.msra.mxu1 %v1660_v0  ;;  %v1168_v0 = vld [vmem:[#allocation6 + $0xd0] sm:$0xff] }
 0x1c6   :  { %v1664_v1 = vpack.c.bf16 %v1047_v4, %v1045_v56  ;;  %1663 = vmatprep.subr.bf16.mxu1 %v1662_v2  ;;  %v1171_v2 = vld [vmem:[#allocation6 + $0xe8] sm:$0xff]  ;;  %v1173_v56 = vld [vmem:[#allocation6 + $0xf8] sm:$0xff]  ;;  %v1692_v4 = vpack.c.bf16 %v1168_v0, %v1166_v63  ;;  %v1299_v55 = vld [vmem:[#allocation7] sm:$0xff] }
 0x1c7   :  { %v1318_v63 = vld [vmem:[#allocation7 + $0x98] sm:$0xff] }
 0x1c8   :  { %1581 = vmatpush1.bf16.msra.mxu0 %v1580_v3  ;;  %v1666_v3 = vpack.c.bf16 %v1145_v15, %v1143_v18  ;;  %v1694_v18 = vpack.c.bf16 %v1173_v56, %v1171_v2  ;;  %v1170_v15 = vld [vmem:[#allocation6 + $0xe0] sm:$0xff] }
 0x1c9   :  { %1583 = vmatprep.subr.bf16.mxu0 %v1582_v48  ;;  %1665 = vmatpush1.bf16.msra.mxu1 %v1664_v1  ;;  %v821_v48 = vld [vmem:[%s2427_s4] sm:$0x3] }
 0x1ca   :  { %1667 = vmatprep.subr.bf16.mxu1 %v1666_v3  ;;  %v826_v22 = vrot.slane %v821_v48, %v2076_v40  ;;  %v830_v24 = vrot.slane %v821_v48, %v2081_v42  ;;  %v1172_v1 = vld [vmem:[#allocation6 + $0xf0] sm:$0xff]  ;;  %v1175_v3 = vld [vmem:[#allocation6 + $0x108] sm:$0xff]  ;;  %v1177_v48 = vld [vmem:[#allocation6 + $0x118] sm:$0xff] }
 0x1cc   :  { %1585 = vmatpush1.bf16.msra.mxu0 %v1584_v36 }
 0x1cd   :  { %1587 = vmatprep.subr.bf16.mxu0 %v1586_v10 }
 0x1d0   :  { %1589 = vmatpush1.bf16.msra.mxu0 %v1588_v41 }
 0x1d1   :  { %1591 = vmatprep.subr.bf16.mxu0 %v1590_v19  ;;  %v1142_v19 = vld [vmem:[#allocation6] sm:$0xff] }
 0x1d2   :  { %v1668_v38 = vpack.c.bf16 %v1144_v14, %v1142_v19  ;;  %v1185_v19 = vld [vmem:[#allocation6 + $0x158] sm:$0xff] }
 0x1d4   :  { %1593 = vmatpush1.bf16.msra.mxu0 %v1592_v33  ;;  %v1149_v33 = vld [vmem:[#allocation6 + $0x38] sm:$0xff] }
 0x1d5   :  { %1595 = vmatprep.subr.bf16.mxu0 %v1594_v7  ;;  %v1670_v43 = vpack.c.bf16 %v1149_v33, %v1147_v12  ;;  %v1184_v12 = vld [vmem:[#allocation6 + $0x150] sm:$0xff] }
 0x1d8   :  { %1597 = vmatpush1.bf16.msra.mxu0 %v1596_v6  ;;  %v1146_v6 = vld [vmem:[#allocation6 + $0x20] sm:$0xff] }
 0x1d9   :  { %1599 = vmatprep.subr.bf16.mxu0 %v1598_v9  ;;  %v1148_v9 = vld [vmem:[#allocation6 + $0x30] sm:$0xff] }
 0x1dc   :  { %1601 = vmatpush1.bf16.msra.mxu0 %v1600_v37  ;;  %v1672_v37 = vpack.c.bf16 %v1148_v9, %v1146_v6  ;;  %v1191_v9 = vld [vmem:[#allocation6 + $0x188] sm:$0xff] }
 0x1dd   :  { %1731 = vmatprep.subr.bf16.mxu0 %v1730_v11 }
 0x1df   :  { %969 = vmatmul.mubr.f32.vlgmr.msra.gmra.mrb[0].mxu0 %v588_v46  ;;  %v1674_v46 = vpack.c.bf16 %v1153_v45, %v1151_v44  ;;  %v1193_v44 = vld [vmem:[#allocation6 + $0x198] sm:$0xff] }
 0x1e0   :  { %v1714_v45 = vpack.c.bf16 %v1193_v44, %v1191_v9  ;;  %v1305_v9 = vld [vmem:[#allocation7 + $0x30] sm:$0xff]  ;;  %v1306_v44 = vld [vmem:[#allocation7 + $0x38] sm:$0xff] }
 0x2b2   :  { %v970_v25 = vpop.f32.mrb[0].mxu0 }
 0x2b3   :  { %v1762_v26 = vadd.f32 %v970_v25, %v826_v22  ;;  %v972_v36 = vpop.f32.mrb[1].mxu0  ;;  %v1696_v22 = vpack.c.bf16 %v1172_v1, %v1170_v15  ;;  %v1174_v25 = vld [vmem:[#allocation6 + $0x100] sm:$0xff]  ;;  %v1320_v1 = vld [vmem:[#allocation7 + $0xa8] sm:$0xff] }
 0x2b4   :  { %v1763_v10 = vadd.f32 %v972_v36, %v830_v24  ;;  %v1698_v24 = vpack.c.bf16 %v1177_v48, %v1175_v3  ;;  %v1179_v36 = vld [vmem:[#allocation6 + $0x128] sm:$0xff]  ;;  %v1319_v15 = vld [vmem:[#allocation7 + $0xa0] sm:$0xff] }
 0x2b5   :  { %v977_v57 = vmul.f32 0.70710677, %v1762_v26  ;;  %v975_v7 = vmul.f32 0.5, %v1762_v26  ;;  %v1176_v26 = vld [vmem:[#allocation6 + $0x110] sm:$0xff]  ;;  %v1738_v48 = vpack.c.bf16 %v1320_v1, %v1319_v15 }
 0x2b6   :  { %v978_v28 = vmul.f32 0.70710677, %v1763_v10  ;;  %v976_v32 = vmul.f32 0.5, %v1763_v10  ;;  %v1181_v10 = vld [vmem:[#allocation6 + $0x138] sm:$0xff] }
 0x2b7   :  { %1815 = verf.f32 %v977_v57  ;;  %v1700_v57 = vpack.c.bf16 %v1176_v26, %v1174_v25  ;;  %v1049_v26 = vld [vmem:[%s2429_s6] sm:$0x3] }
 0x2b8   :  { %1817 = verf.f32 %v978_v28  ;;  %v1702_v28 = vpack.c.bf16 %v1181_v10, %v1179_v36  ;;  %v1054_v36 = vrot.slane %v1049_v26, %v2076_v40  ;;  %v1058_v10 = vrot.slane %v1049_v26, %v2081_v42 }
 0x2c1   :  { %v1816_v62 = vpop.eup %1815 }
 0x2c2   :  { %v1818_v20 = vpop.eup %1817  ;;  %v981_v41 = vadd.f32 1.0, %v1816_v62  ;;  %v1178_v62 = vld [vmem:[#allocation6 + $0x120] sm:$0xff] }
 0x2c3   :  { %v982_v17 = vadd.f32 1.0, %v1818_v20  ;;  %v1180_v20 = vld [vmem:[#allocation6 + $0x130] sm:$0xff] }
 0x2c4   :  { %v983_v39 = vmul.f32 %v981_v41, %v975_v7  ;;  %v1183_v41 = vld [vmem:[#allocation6 + $0x148] sm:$0xff]  ;;  %v1704_v14 = vpack.c.bf16 %v1180_v20, %v1178_v62 }
 0x2c5   :  { %v984_v35 = vmul.f32 %v982_v17, %v976_v32  ;;  %v1706_v32 = vpack.c.bf16 %v1185_v19, %v1183_v41  ;;  %v1182_v17 = vld [vmem:[#allocation6 + $0x140] sm:$0xff]  ;;  %v1187_v7 = vld [vmem:[#allocation6 + $0x168] sm:$0xff] }
 0x2c6   :  { %v1708_v33 = vpack.c.bf16 %v1184_v12, %v1182_v17 }
 0x2c7   :  { %1125 = vmatprep.mubr.f32.mxu1 %v984_v35  ;;  %v1189_v35 = vld [vmem:[#allocation6 + $0x178] sm:$0xff] }
 0x2c8   :  { %1126 = vmatmul.mubr.f32.vlgmr.msra.gmra.mrb[4].mxu1 %v983_v39  ;;  %v1186_v39 = vld [vmem:[#allocation6 + $0x160] sm:$0xff] }
 0x2c9   :  { %1669 = vmatpush1.bf16.msra.mxu1 %v1668_v38  ;;  %v1710_v38 = vpack.c.bf16 %v1189_v35, %v1187_v7 }
 0x2ca   :  { %1671 = vmatprep.subr.bf16.mxu1 %v1670_v43  ;;  %v1188_v43 = vld [vmem:[#allocation6 + $0x170] sm:$0xff] }
 0x2cb   :  { %v1712_v6 = vpack.c.bf16 %v1188_v43, %v1186_v39  ;;  %v1321_v39 = vld [vmem:[#allocation7 + $0xb0] sm:$0xff]  ;;  %v1322_v43 = vld [vmem:[#allocation7 + $0xb8] sm:$0xff] }
 0x2cd   :  { %1673 = vmatpush1.bf16.msra.mxu1 %v1672_v37  ;;  %v1190_v37 = vld [vmem:[#allocation6 + $0x180] sm:$0xff] }
 0x2ce   :  { %1675 = vmatprep.subr.bf16.mxu1 %v1674_v46  ;;  %v1192_v46 = vld [vmem:[#allocation6 + $0x190] sm:$0xff] }
 0x2cf   :  { %v1716_v47 = vpack.c.bf16 %v1192_v46, %v1190_v37  ;;  %v1323_v37 = vld [vmem:[#allocation7 + $0xc0] sm:$0xff]  ;;  %v1324_v46 = vld [vmem:[#allocation7 + $0xc8] sm:$0xff] }
 0x2d1   :  { %1677 = vmatpush1.bf16.msra.mxu1 %v1676_v52  ;;  %v1194_v52 = vld [vmem:[#allocation6 + $0x1a0] sm:$0xff] }
 0x2d2   :  { %1679 = vmatprep.subr.bf16.mxu1 %v1678_v54  ;;  %v1196_v54 = vld [vmem:[#allocation6 + $0x1b0] sm:$0xff] }
 0x2d3   :  { %v1720_v31 = vpack.c.bf16 %v1196_v54, %v1194_v52  ;;  %v1325_v52 = vld [vmem:[#allocation7 + $0xd0] sm:$0xff]  ;;  %v1326_v54 = vld [vmem:[#allocation7 + $0xd8] sm:$0xff] }
 0x2d5   :  { %1681 = vmatpush1.bf16.msra.mxu1 %v1680_v59  ;;  %v1722_v59 = vpack.c.bf16 %v1201_v13, %v1199_v23  ;;  %v1309_v23 = vld [vmem:[#allocation7 + $0x50] sm:$0xff]  ;;  %v1310_v13 = vld [vmem:[#allocation7 + $0x58] sm:$0xff] }
 0x2d6   :  { %1683 = vmatprep.subr.bf16.mxu1 %v1682_v60  ;;  %v1200_v60 = vld [vmem:[#allocation6 + $0x1d0] sm:$0xff] }
 0x2d7   :  { %v1724_v50 = vpack.c.bf16 %v1200_v60, %v1198_v58  ;;  %v1752_v58 = vpack.c.bf16 %v1310_v13, %v1309_v23  ;;  %v1328_v60 = vld [vmem:[#allocation7 + $0xe8] sm:$0xff] }
 0x2d9   :  { %1685 = vmatpush1.bf16.msra.mxu1 %v1684_v5  ;;  %v1202_v5 = vld [vmem:[#allocation6 + $0x1e0] sm:$0xff] }
 0x2da   :  { %1687 = vmatprep.subr.bf16.mxu1 %v1686_v34  ;;  %v1204_v34 = vld [vmem:[#allocation6 + $0x1f0] sm:$0xff] }
 0x2db   :  { %v1728_v0 = vpack.c.bf16 %v1204_v34, %v1202_v5  ;;  %v1330_v5 = vld [vmem:[#allocation7 + $0xf8] sm:$0xff] }
 0x2dd   :  { %1689 = vmatpush1.bf16.msra.mxu1 %v1688_v8  ;;  %v1300_v8 = vld [vmem:[#allocation7 + $0x8] sm:$0xff] }
 0x2de   :  { %1691 = vmatprep.subr.bf16.mxu1 %v1690_v53  ;;  %v1317_v53 = vld [vmem:[#allocation7 + $0x90] sm:$0xff]  ;;  %v1732_v2 = vpack.c.bf16 %v1300_v8, %v1299_v55  ;;  %v1314_v55 = vld [vmem:[#allocation7 + $0x78] sm:$0xff] }
 0x2df   :  { %v1734_v56 = vpack.c.bf16 %v1318_v63, %v1317_v53  ;;  %v1760_v11 = vpack.c.bf16 %v1314_v55, %v1313_v30  ;;  %v1206_v8 = vld [vmem:[%s2431_s8] sm:$0x3] }
 0x2e0   :  { %1733 = vmatpush3.bf16.msra.mxu0 %v1732_v2  ;;  %v1211_v53 = vrot.slane %v1206_v8, %v2076_v40  ;;  %v1215_v63 = vrot.slane %v1206_v8, %v2081_v42  ;;  %v1438_v42 = vld [vmem:[%s2433_s10] ss:$0 sm:$0xff] }
 0x2e1   :  { %1693 = vmatpush1.bf16.msra.mxu1 %v1692_v4  ;;  %v1301_v4 = vld [vmem:[#allocation7 + $0x10] sm:$0xff]  ;;  %1735 = vmatprep.subr.bf16.mxu0 %v1734_v56 }
 0x2e2   :  { %1695 = vmatprep.subr.bf16.mxu1 %v1694_v18  ;;  %v1302_v18 = vld [vmem:[#allocation7 + $0x18] sm:$0xff] }
 0x2e3   :  { %v1736_v3 = vpack.c.bf16 %v1302_v18, %v1301_v4 }
 0x2e5   :  { %1697 = vmatpush1.bf16.msra.mxu1 %v1696_v22  ;;  %v1303_v22 = vld [vmem:[#allocation7 + $0x20] sm:$0xff]  ;;  %1737 = vmatpush3.bf16.msra.mxu0 %v1736_v3 }
 0x2e6   :  { %1699 = vmatprep.subr.bf16.mxu1 %v1698_v24  ;;  %v1304_v24 = vld [vmem:[#allocation7 + $0x28] sm:$0xff]  ;;  %1739 = vmatprep.subr.bf16.mxu0 %v1738_v48 }
 0x2e7   :  { %v1740_v25 = vpack.c.bf16 %v1304_v24, %v1303_v22 }
 0x2e9   :  { %1701 = vmatpush1.bf16.msra.mxu1 %v1700_v57  ;;  %1741 = vmatpush3.bf16.msra.mxu0 %v1740_v25 }
 0x2ea   :  { %1703 = vmatprep.subr.bf16.mxu1 %v1702_v28 }
 0x2ed   :  { %1705 = vmatpush1.bf16.msra.mxu1 %v1704_v14 }
 0x2ee   :  { %1707 = vmatprep.subr.bf16.mxu1 %v1706_v32 }
 0x2f1   :  { %1709 = vmatpush1.bf16.msra.mxu1 %v1708_v33 }
 0x2f2   :  { %1711 = vmatprep.subr.bf16.mxu1 %v1710_v38 }
 0x2f5   :  { %1713 = vmatpush1.bf16.msra.mxu1 %v1712_v6  ;;  %v1742_v6 = vpack.c.bf16 %v1322_v43, %v1321_v39 }
 0x2f6   :  { %1715 = vmatprep.subr.bf16.mxu1 %v1714_v45  ;;  %v1744_v45 = vpack.c.bf16 %v1306_v44, %v1305_v9 }
 0x2f7   :  { %1743 = vmatprep.subr.bf16.mxu0 %v1742_v6 }
 0x2f8   :  { %1745 = vmatpush3.bf16.msra.mxu0 %v1744_v45 }
 0x2f9   :  { %1717 = vmatpush1.bf16.msra.mxu1 %v1716_v47  ;;  %v1746_v47 = vpack.c.bf16 %v1324_v46, %v1323_v37 }
 0x2fa   :  { %1719 = vmatprep.subr.bf16.mxu1 %v1718_v21  ;;  %v1748_v21 = vpack.c.bf16 %v1308_v49, %v1307_v51 }
 0x2fb   :  { %1747 = vmatprep.subr.bf16.mxu0 %v1746_v47 }
 0x2fc   :  { %1749 = vmatpush3.bf16.msra.mxu0 %v1748_v21 }
 0x2fd   :  { %1721 = vmatpush1.bf16.msra.mxu1 %v1720_v31  ;;  %v1750_v31 = vpack.c.bf16 %v1326_v54, %v1325_v52 }
 0x2fe   :  { %1723 = vmatprep.subr.bf16.mxu1 %v1722_v59  ;;  %v1327_v59 = vld [vmem:[#allocation7 + $0xe0] sm:$0xff] }
 0x2ff   :  { %1751 = vmatprep.subr.bf16.mxu0 %v1750_v31  ;;  %v1754_v16 = vpack.c.bf16 %v1328_v60, %v1327_v59 }
 0x300   :  { %1753 = vmatpush3.bf16.msra.mxu0 %v1752_v58 }
 0x301   :  { %1725 = vmatpush1.bf16.msra.mxu1 %v1724_v50  ;;  %v1312_v50 = vld [vmem:[#allocation7 + $0x68] sm:$0xff]  ;;  %1755 = vmatprep.subr.bf16.mxu0 %v1754_v16 }
 0x302   :  { %1727 = vmatprep.subr.bf16.mxu1 %v1726_v29  ;;  %v1329_v29 = vld [vmem:[#allocation7 + $0xf0] sm:$0xff]  ;;  %v1756_v34 = vpack.c.bf16 %v1312_v50, %v1311_v61 }
 0x303   :  { %v1758_v27 = vpack.c.bf16 %v1330_v5, %v1329_v29 }
 0x304   :  { %1757 = vmatpush3.bf16.msra.mxu0 %v1756_v34 }
 0x305   :  { %1729 = vmatpush1.bf16.msra.mxu1 %v1728_v0  ;;  %1759 = vmatprep.subr.bf16.mxu0 %v1758_v27 }
 0x308   :  { %1761 = vmatpush3.bf16.msra.mxu0 %v1760_v11 }
 0x39b   :  { %v1127_v57 = vpop.f32.mrb[4].mxu1 }
 0x39c   :  { %v1128_v28 = vadd.f32 %v1127_v57, %v1054_v36  ;;  %v1129_v62 = vpop.f32.mrb[5].mxu1 }
 0x39d   :  { %v1130_v20 = vadd.f32 %v1129_v62, %v1058_v10 }
 0x39e   :  { %v1134_v41 = vmul.f32 0.70710677, %v1128_v28  ;;  %v1132_v7 = vmul.f32 0.5, %v1128_v28 }
 0x39f   :  { %v1135_v19 = vmul.f32 0.70710677, %v1130_v20  ;;  %v1133_v12 = vmul.f32 0.5, %v1130_v20 }
 0x3a0   :  { %1819 = verf.f32 %v1134_v41 }
 0x3a1   :  { %1821 = verf.f32 %v1135_v19 }
 0x3aa   :  { %v1820_v14 = vpop.eup %1819 }
 0x3ab   :  { %v1822_v32 = vpop.eup %1821  ;;  %v1138_v17 = vadd.f32 1.0, %v1820_v14 }
 0x3ac   :  { %v1139_v33 = vadd.f32 1.0, %v1822_v32 }
 0x3ad   :  { %v1140_v38 = vmul.f32 %v1138_v17, %v1132_v7 }
 0x3ae   :  { %v1141_v35 = vmul.f32 %v1139_v33, %v1133_v12 }
 0x3b0   :  { %1282 = vmatprep.mubr.f32.mxu1 %v1141_v35 }
 0x3b1   :  { %1283 = vmatmul.mubr.f32.vlgmr.msra.gmra.mrb[6].mxu1 %v1140_v38 }
 0x484   :  { %v1284_v0 = vpop.f32.mrb[6].mxu1 }
 0x485   :  { %v1285_v2 = vadd.f32 %v1284_v0, %v1211_v53  ;;  %v1286_v56 = vpop.f32.mrb[7].mxu1 }
 0x486   :  { %v1287_v4 = vadd.f32 %v1286_v56, %v1215_v63 }
 0x487   :  { %v1291_v18 = vmul.f32 0.70710677, %v1285_v2  ;;  %v1289_v25 = vmul.f32 0.5, %v1285_v2 }
 0x488   :  { %v1292_v15 = vmul.f32 0.70710677, %v1287_v4  ;;  %v1290_v22 = vmul.f32 0.5, %v1287_v4 }
 0x489   :  { %1823 = verf.f32 %v1291_v18 }
 0x48a   :  { %1825 = verf.f32 %v1292_v15 }
 0x493   :  { %v1824_v1 = vpop.eup %1823 }
 0x494   :  { %v1826_v3 = vpop.eup %1825  ;;  %v1295_v48 = vadd.f32 1.0, %v1824_v1 }
 0x495   :  { %v1296_v24 = vadd.f32 1.0, %v1826_v3 }
 0x496   :  { %v1297_v36 = vmul.f32 %v1295_v48, %v1289_v25 }
 0x497   :  { %v1298_v26 = vmul.f32 %v1296_v24, %v1290_v22 }
 0x499   :  { %1402 = vmatprep.mubr.f32.mxu0 %v1298_v26 }
 0x49a   :  { %1403 = vmatmul.mubr.f32.vlgmr.msra.gmra.mrb[2].mxu0 %v1297_v36 }
 0x56d   :  { %v1471_v40 = vpop.f32.mrb[2].mxu0 }
 0x56e   :  { %v1472_v10 = vpop.f32.mrb[3].mxu0 }
 0x56f   :  { %v1473_v57 = vadd.f32 %v1472_v10, %v1471_v40 }
 0x571   :  { %v1405_v28 = vadd.f32 %v1473_v57, %v1438_v42 }
 0x573   :  { %1408 = vst [vmem:[%s2434_s11] sm:$0xff] %v1405_v28 }
 0x574   :  { %1413 = vsyncpa [#allocation3], 1 }
 0x575   :  { %1414 = vsyncpa [#allocation5], 1 }
 0x576   :  { %1415 = vsyncpa [#allocation8], 1 }

</bundles_post_ra>
